<compile_context>
chip_gen: v7x
topology: tpu7x:2x2x1
jax: 0.10.0
libtpu: 0.0.40
codegen_flags: <defaults>
</compile_context>

<pallas_src>
import functools
import math

import jax
import jax.numpy as jnp
from jax.experimental import pallas as pl
from jax.experimental import pallas as _pl  # noqa: F401 (alias safety)
from jax.experimental.pallas import tpu as pltpu

# ----------------------------- configuration -------------------------------
VOCAB = 100
VOCAB_PAD = 128                     # pad vocab rows so the one-hot matmul is tile-aligned
HIDDEN = 32
N_LAYERS = 2
N_HEADS = 2
HEAD_DIM = HIDDEN // N_HEADS
INTERMEDIATE = 64
MAX_POS = 16
NO_OUT_LABELS = 3
PAD_OUT = 128                       # lane-dense classifier output width
DROPOUT_P = 0.1
LN_EPS = 1e-12


# ------------------------------- kernel -------------------------------------
def _layernorm(x, g, b):
    mu = jnp.mean(x, axis=-1, keepdims=True)
    xc = x - mu
    var = jnp.mean(xc * xc, axis=-1, keepdims=True)
    return xc * jax.lax.rsqrt(var + LN_EPS) * g + b


def fused_bert_head_kernel(
    ids_ref, word_ref, pos_type_ref, attn_bias_ref,
    emb_ln_g_ref, emb_ln_b_ref,
    wqkv_ref, bqkv_ref, wo_ref, bo_ref,
    ln1_g_ref, ln1_b_ref,
    w1_ref, b1_ref, w2_ref, b2_ref,
    ln2_g_ref, ln2_b_ref,
    cls_w_ref, cls_b_ref,
    *rest, training):
    # trailing refs: optional dropout uniforms (input), output, ctx scratch
    if training:
        drop_ref, out_ref, ctx_scr = rest
    else:
        out_ref, ctx_scr = rest

    BS = ids_ref.shape[0]

    # ---- fused embedding gather: one-hot MXU matmul (f32, exact values) ----
    onehot = (jax.lax.broadcasted_iota(jnp.int32, (BS, VOCAB_PAD), 1)
              == ids_ref[...]).astype(jnp.float32)
    emb = jnp.dot(onehot, word_ref[...], preferred_element_type=jnp.float32)
    emb = emb + pos_type_ref[...]                         # + position + token-type
    h = _layernorm(emb, emb_ln_g_ref[...], emb_ln_b_ref[...])

    attn_bias = attn_bias_ref[...]                        # (BS, BS) additive bias

    # ---- encoder layers; activations never leave VMEM/vregs ----
    for l in range(N_LAYERS):
        # fused QKV projection: one (BS,H) x (H,3H) MXU issue, bf16 operands
        qkv = jnp.dot(h.astype(jnp.bfloat16), wqkv_ref[l],
                      preferred_element_type=jnp.float32) + bqkv_ref[l]
        qkv_b = qkv.astype(jnp.bfloat16)

        # batch-merged per-head attention: 2 dots per head, no transposes,
        # no lane-granular concats (heads written into VMEM scratch).
        for hd in range(N_HEADS):
            c0 = hd * HEAD_DIM
            q_h = qkv_b[:, c0:c0 + HEAD_DIM]                       # scale pre-folded
            k_h = qkv_b[:, HIDDEN + c0:HIDDEN + c0 + HEAD_DIM]
            v_h = qkv_b[:, 2 * HIDDEN + c0:2 * HIDDEN + c0 + HEAD_DIM]

            # Q @ K^T without an explicit transpose (trans_b absorbed by MXU)
            s = jax.lax.dot_general(
                q_h, k_h,
                dimension_numbers=(((1,), (1,)), ((), ())),
                preferred_element_type=jnp.float32) + attn_bias
            s = s - jnp.max(s, axis=-1, keepdims=True)
            p = jnp.exp(s)
            p = p * pl.reciprocal(jnp.sum(p, axis=-1, keepdims=True), approx=True)

            ctx_scr[:, c0:c0 + HEAD_DIM] = jnp.dot(
                p.astype(jnp.bfloat16), v_h, preferred_element_type=jnp.float32)

        attn_out = jnp.dot(ctx_scr[...].astype(jnp.bfloat16), wo_ref[l],
                           preferred_element_type=jnp.float32) + bo_ref[l]
        h = _layernorm(attn_out + h, ln1_g_ref[l], ln1_b_ref[l])

        ff = jnp.dot(h.astype(jnp.bfloat16), w1_ref[l],
                     preferred_element_type=jnp.float32) + b1_ref[l]
        # TODO(synk): HF BERT uses exact erf-GELU; tanh approximation used here.
        ff = jax.nn.gelu(ff, approximate=True)
        ff = jnp.dot(ff.astype(jnp.bfloat16), w2_ref[l],
                     preferred_element_type=jnp.float32) + b2_ref[l]
        h = _layernorm(ff + h, ln2_g_ref[l], ln2_b_ref[l])

    # ---- module head: inverted Dropout + Linear ----
    if training:
        keep = (drop_ref[...] >= jnp.float32(DROPOUT_P)).astype(jnp.float32)
        h = h * keep * jnp.float32(1.0 / (1.0 - DROPOUT_P))
    # lane-dense (PAD_OUT-wide) unmasked store; first NO_OUT_LABELS cols = logits
    out_ref[...] = (jnp.dot(h.astype(jnp.bfloat16), cls_w_ref[...],
                            preferred_element_type=jnp.float32) + cls_b_ref[...])


# ------------------------- parameter construction ----------------------------
def init_params(key):
    def nrm(k, shape, scale=0.02):
        return scale * jax.random.normal(k, shape, dtype=jnp.float32)

    keys = iter(jax.random.split(key, 64))
    inv_sqrt_d = 1.0 / math.sqrt(HEAD_DIM)

    # fold the 1/sqrt(HEAD_DIM) attention scale into the Q projection columns
    wqkv = []
    for _ in range(N_LAYERS):
        w = nrm(next(keys), (HIDDEN, 3 * HIDDEN))
        w = w.at[:, :HIDDEN].multiply(inv_sqrt_d)
        wqkv.append(w)
    # (bqkv is zero, otherwise its Q slice would also be scaled by inv_sqrt_d)

    word_emb = jnp.pad(nrm(next(keys), (VOCAB, HIDDEN)),
                       ((0, VOCAB_PAD - VOCAB), (0, 0)))          # pad unused rows

    params = {
        "word_emb": word_emb,                                      # f32 (128, 32)
        "pos_emb": nrm(next(keys), (MAX_POS, HIDDEN)),
        "type_emb": nrm(next(keys), (2, HIDDEN)),
        "emb_ln_g": jnp.ones((1, HIDDEN), jnp.float32),
        "emb_ln_b": jnp.zeros((1, HIDDEN), jnp.float32),
        # per-layer weights stacked on a leading layer axis, stored bf16 for MXU
        "wqkv": jnp.stack(wqkv).astype(jnp.bfloat16),
        "bqkv": jnp.zeros((N_LAYERS, 1, 3 * HIDDEN), jnp.float32),
        "wo": jnp.stack([nrm(next(keys), (HIDDEN, HIDDEN))
                         for _ in range(N_LAYERS)]).astype(jnp.bfloat16),
        "bo": jnp.zeros((N_LAYERS, 1, HIDDEN), jnp.float32),
        "ln1_g": jnp.ones((N_LAYERS, 1, HIDDEN), jnp.float32),
        "ln1_b": jnp.zeros((N_LAYERS, 1, HIDDEN), jnp.float32),
        "w1": jnp.stack([nrm(next(keys), (HIDDEN, INTERMEDIATE))
                         for _ in range(N_LAYERS)]).astype(jnp.bfloat16),
        "b1": jnp.zeros((N_LAYERS, 1, INTERMEDIATE), jnp.float32),
        "w2": jnp.stack([nrm(next(keys), (INTERMEDIATE, HIDDEN))
                         for _ in range(N_LAYERS)]).astype(jnp.bfloat16),
        "b2": jnp.zeros((N_LAYERS, 1, HIDDEN), jnp.float32),
        "ln2_g": jnp.ones((N_LAYERS, 1, HIDDEN), jnp.float32),
        "ln2_b": jnp.zeros((N_LAYERS, 1, HIDDEN), jnp.float32),
        # classifier stored (in, out), lane-padded to PAD_OUT output columns
        "cls_w": jnp.pad(nrm(next(keys), (HIDDEN, NO_OUT_LABELS)),
                         ((0, 0), (0, PAD_OUT - NO_OUT_LABELS))
                         ).astype(jnp.bfloat16),
        "cls_b": jnp.zeros((1, PAD_OUT), jnp.float32),
    }
    return params


# ------------------------------ forward pass ---------------------------------
def absa_bert_dropout_linear_forward(params, ids, mask, dropout_key=None,
                                     training=True):
    B, S = ids.shape
    BS = B * S

    # token ids as a (BS, 1) int32 column vector -> one-hot built in-kernel
    ids2d = ids.reshape(BS, 1).astype(jnp.int32)

    # input-independent position + token-type embedding rows, (BS, H)
    pos_type = (jnp.tile(params["pos_emb"][:S], (B, 1))
                + params["type_emb"][0][None, :])

    # (BS, BS) additive attention bias: HF-style -10000 on padded keys within a
    # batch, huge negative on cross-batch blocks (batches merged on one axis).
    mask_flat = mask.reshape(BS).astype(jnp.float32)
    batch_ids = jnp.repeat(jnp.arange(B, dtype=jnp.int32), S)
    same_batch = batch_ids[:, None] == batch_ids[None, :]
    attn_bias = jnp.where(same_batch,
                          (1.0 - mask_flat)[None, :] * -10000.0,
                          jnp.float32(-1e9))

    args = [ids2d, params["word_emb"], pos_type, attn_bias,
            params["emb_ln_g"], params["emb_ln_b"],
            params["wqkv"], params["bqkv"], params["wo"], params["bo"],
            params["ln1_g"], params["ln1_b"],
            params["w1"], params["b1"], params["w2"], params["b2"],
            params["ln2_g"], params["ln2_b"],
            params["cls_w"], params["cls_b"]]
    if training:
        # TODO(synk): in-kernel pltpu.prng_random_bits is not lowerable in this
        # sandbox; dropout uniforms are drawn host-side, compare runs in-kernel.
        args.append(jax.random.uniform(dropout_key, (BS, HIDDEN),
                                       dtype=jnp.float32))

    logits_padded = pl.pallas_call(
        functools.partial(fused_bert_head_kernel, training=training),
        out_shape=jax.ShapeDtypeStruct((BS, PAD_OUT), jnp.float32),
        scratch_shapes=[pltpu.VMEM((BS, HIDDEN), jnp.float32)],   # ctx buffer
    )(*args)

    return logits_padded[:, :NO_OUT_LABELS].reshape(B, S, NO_OUT_LABELS)


# --------------------------------- main ---------------------------------------
if __name__ == "__main__":
    key = jax.random.PRNGKey(0)
    pkey, ikey, dkey = jax.random.split(key, 3)
    params = init_params(pkey)

    B, S = 2, 8
    ids_tensors = jax.random.randint(ikey, (B, S), 0, VOCAB, dtype=jnp.int32)
    masks_tensors = jnp.array([[1, 1, 1, 1, 1, 1, 1, 1],
                               [1, 1, 1, 1, 1, 1, 0, 0]], dtype=jnp.int32)

    out = absa_bert_dropout_linear_forward(params, ids_tensors, masks_tensors,
                                           dkey, training=True)
    out = jax.block_until_ready(out)
    assert out.shape == (B, S, NO_OUT_LABELS) and out.dtype == jnp.float32
    print("KERNEL_OK")
</pallas_src>

<mosaic_0001>
module attributes {stable_mosaic.version = 11 : i64} {
  func.func @fused_bert_head_kernel(%arg0: memref<16x1xi32, #tpu.memory_space<vmem>>, %arg1: memref<128x32xf32, #tpu.memory_space<vmem>>, %arg2: memref<16x32xf32, #tpu.memory_space<vmem>>, %arg3: memref<16x16xf32, #tpu.memory_space<vmem>>, %arg4: memref<1x32xf32, #tpu.memory_space<vmem>>, %arg5: memref<1x32xf32, #tpu.memory_space<vmem>>, %arg6: memref<2x32x96xbf16, #tpu.memory_space<vmem>>, %arg7: memref<2x1x96xf32, #tpu.memory_space<vmem>>, %arg8: memref<2x32x32xbf16, #tpu.memory_space<vmem>>, %arg9: memref<2x1x32xf32, #tpu.memory_space<vmem>>, %arg10: memref<2x1x32xf32, #tpu.memory_space<vmem>>, %arg11: memref<2x1x32xf32, #tpu.memory_space<vmem>>, %arg12: memref<2x32x64xbf16, #tpu.memory_space<vmem>>, %arg13: memref<2x1x64xf32, #tpu.memory_space<vmem>>, %arg14: memref<2x64x32xbf16, #tpu.memory_space<vmem>>, %arg15: memref<2x1x32xf32, #tpu.memory_space<vmem>>, %arg16: memref<2x1x32xf32, #tpu.memory_space<vmem>>, %arg17: memref<2x1x32xf32, #tpu.memory_space<vmem>>, %arg18: memref<32x128xbf16, #tpu.memory_space<vmem>>, %arg19: memref<1x128xf32, #tpu.memory_space<vmem>>, %arg20: memref<16x32xf32, #tpu.memory_space<vmem>>, %arg21: memref<16x128xf32, #tpu.memory_space<vmem>>, %arg22: memref<16x32xf32, #tpu.memory_space<vmem>>) attributes {dimension_semantics = [], scalar_prefetch = 0 : i64, scratch_operands = 1 : i64, tpu.core_type = #tpu.core_type<tc>} {
    %0 = tpu.iota {dimensions = array<i32: 1>} : vector<16x128xi32>
    %c0 = arith.constant 0 : index
    %c0_0 = arith.constant 0 : index
    %1 = vector.load %arg0[%c0, %c0_0] : memref<16x1xi32, #tpu.memory_space<vmem>>, vector<16x1xi32>
    %2 = vector.broadcast %1 : vector<16x1xi32> to vector<16x128xi32>
    %3 = arith.cmpi eq, %0, %2 : vector<16x128xi32>
    %4 = arith.extui %3 : vector<16x128xi1> to vector<16x128xi32>
    %5 = arith.sitofp %4 : vector<16x128xi32> to vector<16x128xf32>
    %c0_1 = arith.constant 0 : index
    %c0_2 = arith.constant 0 : index
    %6 = vector.load %arg1[%c0_1, %c0_2] : memref<128x32xf32, #tpu.memory_space<vmem>>, vector<128x32xf32>
    %cst = arith.constant dense<0.000000e+00> : vector<16x32xf32>
    %7 = tpu.matmul %5, %6, %cst {dimension_numbers = #tpu.dot_dimension_numbers<[1], [0], [0], [1], [0, 0, 1, 1], [], []>} : vector<16x128xf32>, vector<128x32xf32>, vector<16x32xf32> -> vector<16x32xf32>
    %c0_3 = arith.constant 0 : index
    %c0_4 = arith.constant 0 : index
    %8 = vector.load %arg2[%c0_3, %c0_4] : memref<16x32xf32, #tpu.memory_space<vmem>>, vector<16x32xf32>
    %9 = arith.addf %7, %8 : vector<16x32xf32>
    %c0_5 = arith.constant 0 : index
    %c0_6 = arith.constant 0 : index
    %10 = vector.load %arg4[%c0_5, %c0_6] : memref<1x32xf32, #tpu.memory_space<vmem>>, vector<1x32xf32>
    %c0_7 = arith.constant 0 : index
    %c0_8 = arith.constant 0 : index
    %11 = vector.load %arg5[%c0_7, %c0_8] : memref<1x32xf32, #tpu.memory_space<vmem>>, vector<1x32xf32>
    %cst_9 = arith.constant dense<0.000000e+00> : vector<16xf32>
    %12 = vector.multi_reduction <add>, %9, %cst_9 [1] : vector<16x32xf32> to vector<16xf32>
    %13 = vector.shape_cast %12 : vector<16xf32> to vector<16x1xf32>
    %cst_10 = arith.constant 3.200000e+01 : f32
    %14 = vector.broadcast %cst_10 : f32 to vector<16x1xf32>
    %15 = arith.divf %13, %14 : vector<16x1xf32>
    %16 = vector.broadcast %15 : vector<16x1xf32> to vector<16x32xf32>
    %17 = arith.subf %9, %16 : vector<16x32xf32>
    %18 = arith.mulf %17, %17 : vector<16x32xf32>
    %cst_11 = arith.constant dense<0.000000e+00> : vector<16xf32>
    %19 = vector.multi_reduction <add>, %18, %cst_11 [1] : vector<16x32xf32> to vector<16xf32>
    %20 = vector.shape_cast %19 : vector<16xf32> to vector<16x1xf32>
    %cst_12 = arith.constant 3.200000e+01 : f32
    %21 = vector.broadcast %cst_12 : f32 to vector<16x1xf32>
    %22 = arith.divf %20, %21 : vector<16x1xf32>
    %cst_13 = arith.constant 9.99999996E-13 : f32
    %23 = vector.broadcast %cst_13 : f32 to vector<16x1xf32>
    %24 = arith.addf %22, %23 : vector<16x1xf32>
    %25 = math.rsqrt %24 : vector<16x1xf32>
    %26 = vector.broadcast %25 : vector<16x1xf32> to vector<16x32xf32>
    %27 = arith.mulf %17, %26 : vector<16x32xf32>
    %28 = vector.broadcast %10 : vector<1x32xf32> to vector<16x32xf32>
    %29 = arith.mulf %27, %28 : vector<16x32xf32>
    %30 = vector.broadcast %11 : vector<1x32xf32> to vector<16x32xf32>
    %31 = arith.addf %29, %30 : vector<16x32xf32>
    %c0_14 = arith.constant 0 : index
    %c0_15 = arith.constant 0 : index
    %32 = vector.load %arg3[%c0_14, %c0_15] : memref<16x16xf32, #tpu.memory_space<vmem>>, vector<16x16xf32>
    %33 = arith.truncf %31 : vector<16x32xf32> to vector<16x32xbf16>
    %c0_16 = arith.constant 0 : index
    %c0_17 = arith.constant 0 : index
    %c0_18 = arith.constant 0 : index
    %34 = vector.load %arg6[%c0_16, %c0_17, %c0_18] : memref<2x32x96xbf16, #tpu.memory_space<vmem>>, vector<1x32x96xbf16>
    %35 = vector.shape_cast %34 : vector<1x32x96xbf16> to vector<32x96xbf16>
    %cst_19 = arith.constant dense<0.000000e+00> : vector<16x96xf32>
    %36 = tpu.matmul %33, %35, %cst_19 {dimension_numbers = #tpu.dot_dimension_numbers<[1], [0], [0], [1], [0, 0, 1, 1], [], []>} : vector<16x32xbf16>, vector<32x96xbf16>, vector<16x96xf32> -> vector<16x96xf32>
    %c0_20 = arith.constant 0 : index
    %c0_21 = arith.constant 0 : index
    %c0_22 = arith.constant 0 : index
    %37 = vector.load %arg7[%c0_20, %c0_21, %c0_22] : memref<2x1x96xf32, #tpu.memory_space<vmem>>, vector<1x1x96xf32>
    %38 = vector.shape_cast %37 : vector<1x1x96xf32> to vector<1x96xf32>
    %39 = vector.broadcast %38 : vector<1x96xf32> to vector<16x96xf32>
    %40 = arith.addf %36, %39 : vector<16x96xf32>
    %41 = arith.truncf %40 : vector<16x96xf32> to vector<16x96xbf16>
    %42 = vector.extract_strided_slice %41 {offsets = [0, 0], sizes = [16, 16], strides = [1, 1]} : vector<16x96xbf16> to vector<16x16xbf16>
    %43 = vector.extract_strided_slice %41 {offsets = [0, 32], sizes = [16, 16], strides = [1, 1]} : vector<16x96xbf16> to vector<16x16xbf16>
    %44 = vector.extract_strided_slice %41 {offsets = [0, 64], sizes = [16, 16], strides = [1, 1]} : vector<16x96xbf16> to vector<16x16xbf16>
    %cst_23 = arith.constant dense<0.000000e+00> : vector<16x16xf32>
    %45 = tpu.matmul %42, %43, %cst_23 {dimension_numbers = #tpu.dot_dimension_numbers<[1], [1], [0], [0], [0, 0, 1, 0], [], []>} : vector<16x16xbf16>, vector<16x16xbf16>, vector<16x16xf32> -> vector<16x16xf32>
    %46 = arith.addf %45, %32 : vector<16x16xf32>
    %cst_24 = arith.constant dense<0xFF800000> : vector<16xf32>
    %47 = vector.multi_reduction <maximumf>, %46, %cst_24 [1] : vector<16x16xf32> to vector<16xf32>
    %48 = vector.shape_cast %47 : vector<16xf32> to vector<16x1xf32>
    %49 = vector.broadcast %48 : vector<16x1xf32> to vector<16x16xf32>
    %50 = arith.subf %46, %49 : vector<16x16xf32>
    %51 = math.exp %50 : vector<16x16xf32>
    %cst_25 = arith.constant dense<0.000000e+00> : vector<16xf32>
    %52 = vector.multi_reduction <add>, %51, %cst_25 [1] : vector<16x16xf32> to vector<16xf32>
    %53 = vector.shape_cast %52 : vector<16xf32> to vector<16x1xf32>
    %54 = tpu.reciprocal %53 {approx = true} : vector<16x1xf32> -> vector<16x1xf32>
    %55 = vector.broadcast %54 : vector<16x1xf32> to vector<16x16xf32>
    %56 = arith.mulf %51, %55 : vector<16x16xf32>
    %57 = arith.truncf %56 : vector<16x16xf32> to vector<16x16xbf16>
    %cst_26 = arith.constant dense<0.000000e+00> : vector<16x16xf32>
    %58 = tpu.matmul %57, %44, %cst_26 {dimension_numbers = #tpu.dot_dimension_numbers<[1], [0], [0], [1], [0, 0, 1, 1], [], []>} : vector<16x16xbf16>, vector<16x16xbf16>, vector<16x16xf32> -> vector<16x16xf32>
    %c0_27 = arith.constant 0 : index
    %c0_28 = arith.constant 0 : index
    %59 = vector.load %arg22[%c0_27, %c0_28] : memref<16x32xf32, #tpu.memory_space<vmem>>, vector<16x16xf32>
    tpu.vector_store %arg22[%c0_27, %c0_28], %58 {strides = array<i32>} : memref<16x32xf32, #tpu.memory_space<vmem>>, vector<16x16xf32>,
    %60 = vector.extract_strided_slice %41 {offsets = [0, 16], sizes = [16, 16], strides = [1, 1]} : vector<16x96xbf16> to vector<16x16xbf16>
    %61 = vector.extract_strided_slice %41 {offsets = [0, 48], sizes = [16, 16], strides = [1, 1]} : vector<16x96xbf16> to vector<16x16xbf16>
    %62 = vector.extract_strided_slice %41 {offsets = [0, 80], sizes = [16, 16], strides = [1, 1]} : vector<16x96xbf16> to vector<16x16xbf16>
    %cst_29 = arith.constant dense<0.000000e+00> : vector<16x16xf32>
    %63 = tpu.matmul %60, %61, %cst_29 {dimension_numbers = #tpu.dot_dimension_numbers<[1], [1], [0], [0], [0, 0, 1, 0], [], []>} : vector<16x16xbf16>, vector<16x16xbf16>, vector<16x16xf32> -> vector<16x16xf32>
    %64 = arith.addf %63, %32 : vector<16x16xf32>
    %cst_30 = arith.constant dense<0xFF800000> : vector<16xf32>
    %65 = vector.multi_reduction <maximumf>, %64, %cst_30 [1] : vector<16x16xf32> to vector<16xf32>
    %66 = vector.shape_cast %65 : vector<16xf32> to vector<16x1xf32>
    %67 = vector.broadcast %66 : vector<16x1xf32> to vector<16x16xf32>
    %68 = arith.subf %64, %67 : vector<16x16xf32>
    %69 = math.exp %68 : vector<16x16xf32>
    %cst_31 = arith.constant dense<0.000000e+00> : vector<16xf32>
    %70 = vector.multi_reduction <add>, %69, %cst_31 [1] : vector<16x16xf32> to vector<16xf32>
    %71 = vector.shape_cast %70 : vector<16xf32> to vector<16x1xf32>
    %72 = tpu.reciprocal %71 {approx = true} : vector<16x1xf32> -> vector<16x1xf32>
    %73 = vector.broadcast %72 : vector<16x1xf32> to vector<16x16xf32>
    %74 = arith.mulf %69, %73 : vector<16x16xf32>
    %75 = arith.truncf %74 : vector<16x16xf32> to vector<16x16xbf16>
    %cst_32 = arith.constant dense<0.000000e+00> : vector<16x16xf32>
    %76 = tpu.matmul %75, %62, %cst_32 {dimension_numbers = #tpu.dot_dimension_numbers<[1], [0], [0], [1], [0, 0, 1, 1], [], []>} : vector<16x16xbf16>, vector<16x16xbf16>, vector<16x16xf32> -> vector<16x16xf32>
    %c0_33 = arith.constant 0 : index
    %c16 = arith.constant 16 : index
    %77 = vector.load %arg22[%c0_33, %c16] : memref<16x32xf32, #tpu.memory_space<vmem>>, vector<16x16xf32>
    tpu.vector_store %arg22[%c0_33, %c16], %76 {strides = array<i32>} : memref<16x32xf32, #tpu.memory_space<vmem>>, vector<16x16xf32>,
    %c0_34 = arith.constant 0 : index
    %c0_35 = arith.constant 0 : index
    %78 = vector.load %arg22[%c0_34, %c0_35] : memref<16x32xf32, #tpu.memory_space<vmem>>, vector<16x32xf32>
    %79 = arith.truncf %78 : vector<16x32xf32> to vector<16x32xbf16>
    %c0_36 = arith.constant 0 : index
    %c0_37 = arith.constant 0 : index
    %c0_38 = arith.constant 0 : index
    %80 = vector.load %arg8[%c0_36, %c0_37, %c0_38] : memref<2x32x32xbf16, #tpu.memory_space<vmem>>, vector<1x32x32xbf16>
    %81 = vector.shape_cast %80 : vector<1x32x32xbf16> to vector<32x32xbf16>
    %cst_39 = arith.constant dense<0.000000e+00> : vector<16x32xf32>
    %82 = tpu.matmul %79, %81, %cst_39 {dimension_numbers = #tpu.dot_dimension_numbers<[1], [0], [0], [1], [0, 0, 1, 1], [], []>} : vector<16x32xbf16>, vector<32x32xbf16>, vector<16x32xf32> -> vector<16x32xf32>
    %c0_40 = arith.constant 0 : index
    %c0_41 = arith.constant 0 : index
    %c0_42 = arith.constant 0 : index
    %83 = vector.load %arg9[%c0_40, %c0_41, %c0_42] : memref<2x1x32xf32, #tpu.memory_space<vmem>>, vector<1x1x32xf32>
    %84 = vector.shape_cast %83 : vector<1x1x32xf32> to vector<1x32xf32>
    %85 = vector.broadcast %84 : vector<1x32xf32> to vector<16x32xf32>
    %86 = arith.addf %82, %85 : vector<16x32xf32>
    %87 = arith.addf %86, %31 : vector<16x32xf32>
    %c0_43 = arith.constant 0 : index
    %c0_44 = arith.constant 0 : index
    %c0_45 = arith.constant 0 : index
    %88 = vector.load %arg10[%c0_43, %c0_44, %c0_45] : memref<2x1x32xf32, #tpu.memory_space<vmem>>, vector<1x1x32xf32>
    %89 = vector.shape_cast %88 : vector<1x1x32xf32> to vector<1x32xf32>
    %c0_46 = arith.constant 0 : index
    %c0_47 = arith.constant 0 : index
    %c0_48 = arith.constant 0 : index
    %90 = vector.load %arg11[%c0_46, %c0_47, %c0_48] : memref<2x1x32xf32, #tpu.memory_space<vmem>>, vector<1x1x32xf32>
    %91 = vector.shape_cast %90 : vector<1x1x32xf32> to vector<1x32xf32>
    %cst_49 = arith.constant dense<0.000000e+00> : vector<16xf32>
    %92 = vector.multi_reduction <add>, %87, %cst_49 [1] : vector<16x32xf32> to vector<16xf32>
    %93 = vector.shape_cast %92 : vector<16xf32> to vector<16x1xf32>
    %cst_50 = arith.constant 3.200000e+01 : f32
    %94 = vector.broadcast %cst_50 : f32 to vector<16x1xf32>
    %95 = arith.divf %93, %94 : vector<16x1xf32>
    %96 = vector.broadcast %95 : vector<16x1xf32> to vector<16x32xf32>
    %97 = arith.subf %87, %96 : vector<16x32xf32>
    %98 = arith.mulf %97, %97 : vector<16x32xf32>
    %cst_51 = arith.constant dense<0.000000e+00> : vector<16xf32>
    %99 = vector.multi_reduction <add>, %98, %cst_51 [1] : vector<16x32xf32> to vector<16xf32>
    %100 = vector.shape_cast %99 : vector<16xf32> to vector<16x1xf32>
    %cst_52 = arith.constant 3.200000e+01 : f32
    %101 = vector.broadcast %cst_52 : f32 to vector<16x1xf32>
    %102 = arith.divf %100, %101 : vector<16x1xf32>
    %cst_53 = arith.constant 9.99999996E-13 : f32
    %103 = vector.broadcast %cst_53 : f32 to vector<16x1xf32>
    %104 = arith.addf %102, %103 : vector<16x1xf32>
    %105 = math.rsqrt %104 : vector<16x1xf32>
    %106 = vector.broadcast %105 : vector<16x1xf32> to vector<16x32xf32>
    %107 = arith.mulf %97, %106 : vector<16x32xf32>
    %108 = vector.broadcast %89 : vector<1x32xf32> to vector<16x32xf32>
    %109 = arith.mulf %107, %108 : vector<16x32xf32>
    %110 = vector.broadcast %91 : vector<1x32xf32> to vector<16x32xf32>
    %111 = arith.addf %109, %110 : vector<16x32xf32>
    %112 = arith.truncf %111 : vector<16x32xf32> to vector<16x32xbf16>
    %c0_54 = arith.constant 0 : index
    %c0_55 = arith.constant 0 : index
    %c0_56 = arith.constant 0 : index
    %113 = vector.load %arg12[%c0_54, %c0_55, %c0_56] : memref<2x32x64xbf16, #tpu.memory_space<vmem>>, vector<1x32x64xbf16>
    %114 = vector.shape_cast %113 : vector<1x32x64xbf16> to vector<32x64xbf16>
    %cst_57 = arith.constant dense<0.000000e+00> : vector<16x64xf32>
    %115 = tpu.matmul %112, %114, %cst_57 {dimension_numbers = #tpu.dot_dimension_numbers<[1], [0], [0], [1], [0, 0, 1, 1], [], []>} : vector<16x32xbf16>, vector<32x64xbf16>, vector<16x64xf32> -> vector<16x64xf32>
    %c0_58 = arith.constant 0 : index
    %c0_59 = arith.constant 0 : index
    %c0_60 = arith.constant 0 : index
    %116 = vector.load %arg13[%c0_58, %c0_59, %c0_60] : memref<2x1x64xf32, #tpu.memory_space<vmem>>, vector<1x1x64xf32>
    %117 = vector.shape_cast %116 : vector<1x1x64xf32> to vector<1x64xf32>
    %118 = vector.broadcast %117 : vector<1x64xf32> to vector<16x64xf32>
    %119 = arith.addf %115, %118 : vector<16x64xf32>
    %120 = arith.mulf %119, %119 : vector<16x64xf32>
    %121 = arith.mulf %119, %120 : vector<16x64xf32>
    %cst_61 = arith.constant 4.471500e-02 : f32
    %122 = vector.broadcast %cst_61 : f32 to vector<16x64xf32>
    %123 = arith.mulf %122, %121 : vector<16x64xf32>
    %124 = arith.addf %119, %123 : vector<16x64xf32>
    %cst_62 = arith.constant 0.797884583 : f32
    %125 = vector.broadcast %cst_62 : f32 to vector<16x64xf32>
    %126 = arith.mulf %125, %124 : vector<16x64xf32>
    %127 = math.tanh %126 : vector<16x64xf32>
    %cst_63 = arith.constant 1.000000e+00 : f32
    %128 = vector.broadcast %cst_63 : f32 to vector<16x64xf32>
    %129 = arith.addf %128, %127 : vector<16x64xf32>
    %cst_64 = arith.constant 5.000000e-01 : f32
    %130 = vector.broadcast %cst_64 : f32 to vector<16x64xf32>
    %131 = arith.mulf %130, %129 : vector<16x64xf32>
    %132 = arith.mulf %119, %131 : vector<16x64xf32>
    %133 = arith.truncf %132 : vector<16x64xf32> to vector<16x64xbf16>
    %c0_65 = arith.constant 0 : index
    %c0_66 = arith.constant 0 : index
    %c0_67 = arith.constant 0 : index
    %134 = vector.load %arg14[%c0_65, %c0_66, %c0_67] : memref<2x64x32xbf16, #tpu.memory_space<vmem>>, vector<1x64x32xbf16>
    %135 = vector.shape_cast %134 : vector<1x64x32xbf16> to vector<64x32xbf16>
    %cst_68 = arith.constant dense<0.000000e+00> : vector<16x32xf32>
    %136 = tpu.matmul %133, %135, %cst_68 {dimension_numbers = #tpu.dot_dimension_numbers<[1], [0], [0], [1], [0, 0, 1, 1], [], []>} : vector<16x64xbf16>, vector<64x32xbf16>, vector<16x32xf32> -> vector<16x32xf32>
    %c0_69 = arith.constant 0 : index
    %c0_70 = arith.constant 0 : index
    %c0_71 = arith.constant 0 : index
    %137 = vector.load %arg15[%c0_69, %c0_70, %c0_71] : memref<2x1x32xf32, #tpu.memory_space<vmem>>, vector<1x1x32xf32>
    %138 = vector.shape_cast %137 : vector<1x1x32xf32> to vector<1x32xf32>
    %139 = vector.broadcast %138 : vector<1x32xf32> to vector<16x32xf32>
    %140 = arith.addf %136, %139 : vector<16x32xf32>
    %141 = arith.addf %140, %111 : vector<16x32xf32>
    %c0_72 = arith.constant 0 : index
    %c0_73 = arith.constant 0 : index
    %c0_74 = arith.constant 0 : index
    %142 = vector.load %arg16[%c0_72, %c0_73, %c0_74] : memref<2x1x32xf32, #tpu.memory_space<vmem>>, vector<1x1x32xf32>
    %143 = vector.shape_cast %142 : vector<1x1x32xf32> to vector<1x32xf32>
    %c0_75 = arith.constant 0 : index
    %c0_76 = arith.constant 0 : index
    %c0_77 = arith.constant 0 : index
    %144 = vector.load %arg17[%c0_75, %c0_76, %c0_77] : memref<2x1x32xf32, #tpu.memory_space<vmem>>, vector<1x1x32xf32>
    %145 = vector.shape_cast %144 : vector<1x1x32xf32> to vector<1x32xf32>
    %cst_78 = arith.constant dense<0.000000e+00> : vector<16xf32>
    %146 = vector.multi_reduction <add>, %141, %cst_78 [1] : vector<16x32xf32> to vector<16xf32>
    %147 = vector.shape_cast %146 : vector<16xf32> to vector<16x1xf32>
    %cst_79 = arith.constant 3.200000e+01 : f32
    %148 = vector.broadcast %cst_79 : f32 to vector<16x1xf32>
    %149 = arith.divf %147, %148 : vector<16x1xf32>
    %150 = vector.broadcast %149 : vector<16x1xf32> to vector<16x32xf32>
    %151 = arith.subf %141, %150 : vector<16x32xf32>
    %152 = arith.mulf %151, %151 : vector<16x32xf32>
    %cst_80 = arith.constant dense<0.000000e+00> : vector<16xf32>
    %153 = vector.multi_reduction <add>, %152, %cst_80 [1] : vector<16x32xf32> to vector<16xf32>
    %154 = vector.shape_cast %153 : vector<16xf32> to vector<16x1xf32>
    %cst_81 = arith.constant 3.200000e+01 : f32
    %155 = vector.broadcast %cst_81 : f32 to vector<16x1xf32>
    %156 = arith.divf %154, %155 : vector<16x1xf32>
    %cst_82 = arith.constant 9.99999996E-13 : f32
    %157 = vector.broadcast %cst_82 : f32 to vector<16x1xf32>
    %158 = arith.addf %156, %157 : vector<16x1xf32>
    %159 = math.rsqrt %158 : vector<16x1xf32>
    %160 = vector.broadcast %159 : vector<16x1xf32> to vector<16x32xf32>
    %161 = arith.mulf %151, %160 : vector<16x32xf32>
    %162 = vector.broadcast %143 : vector<1x32xf32> to vector<16x32xf32>
    %163 = arith.mulf %161, %162 : vector<16x32xf32>
    %164 = vector.broadcast %145 : vector<1x32xf32> to vector<16x32xf32>
    %165 = arith.addf %163, %164 : vector<16x32xf32>
    %166 = arith.truncf %165 : vector<16x32xf32> to vector<16x32xbf16>
    %c1 = arith.constant 1 : index
    %c0_83 = arith.constant 0 : index
    %c0_84 = arith.constant 0 : index
    %167 = vector.load %arg6[%c1, %c0_83, %c0_84] : memref<2x32x96xbf16, #tpu.memory_space<vmem>>, vector<1x32x96xbf16>
    %168 = vector.shape_cast %167 : vector<1x32x96xbf16> to vector<32x96xbf16>
    %cst_85 = arith.constant dense<0.000000e+00> : vector<16x96xf32>
    %169 = tpu.matmul %166, %168, %cst_85 {dimension_numbers = #tpu.dot_dimension_numbers<[1], [0], [0], [1], [0, 0, 1, 1], [], []>} : vector<16x32xbf16>, vector<32x96xbf16>, vector<16x96xf32> -> vector<16x96xf32>
    %c1_86 = arith.constant 1 : index
    %c0_87 = arith.constant 0 : index
    %c0_88 = arith.constant 0 : index
    %170 = vector.load %arg7[%c1_86, %c0_87, %c0_88] : memref<2x1x96xf32, #tpu.memory_space<vmem>>, vector<1x1x96xf32>
    %171 = vector.shape_cast %170 : vector<1x1x96xf32> to vector<1x96xf32>
    %172 = vector.broadcast %171 : vector<1x96xf32> to vector<16x96xf32>
    %173 = arith.addf %169, %172 : vector<16x96xf32>
    %174 = arith.truncf %173 : vector<16x96xf32> to vector<16x96xbf16>
    %175 = vector.extract_strided_slice %174 {offsets = [0, 0], sizes = [16, 16], strides = [1, 1]} : vector<16x96xbf16> to vector<16x16xbf16>
    %176 = vector.extract_strided_slice %174 {offsets = [0, 32], sizes = [16, 16], strides = [1, 1]} : vector<16x96xbf16> to vector<16x16xbf16>
    %177 = vector.extract_strided_slice %174 {offsets = [0, 64], sizes = [16, 16], strides = [1, 1]} : vector<16x96xbf16> to vector<16x16xbf16>
    %cst_89 = arith.constant dense<0.000000e+00> : vector<16x16xf32>
    %178 = tpu.matmul %175, %176, %cst_89 {dimension_numbers = #tpu.dot_dimension_numbers<[1], [1], [0], [0], [0, 0, 1, 0], [], []>} : vector<16x16xbf16>, vector<16x16xbf16>, vector<16x16xf32> -> vector<16x16xf32>
    %179 = arith.addf %178, %32 : vector<16x16xf32>
    %cst_90 = arith.constant dense<0xFF800000> : vector<16xf32>
    %180 = vector.multi_reduction <maximumf>, %179, %cst_90 [1] : vector<16x16xf32> to vector<16xf32>
    %181 = vector.shape_cast %180 : vector<16xf32> to vector<16x1xf32>
    %182 = vector.broadcast %181 : vector<16x1xf32> to vector<16x16xf32>
    %183 = arith.subf %179, %182 : vector<16x16xf32>
    %184 = math.exp %183 : vector<16x16xf32>
    %cst_91 = arith.constant dense<0.000000e+00> : vector<16xf32>
    %185 = vector.multi_reduction <add>, %184, %cst_91 [1] : vector<16x16xf32> to vector<16xf32>
    %186 = vector.shape_cast %185 : vector<16xf32> to vector<16x1xf32>
    %187 = tpu.reciprocal %186 {approx = true} : vector<16x1xf32> -> vector<16x1xf32>
    %188 = vector.broadcast %187 : vector<16x1xf32> to vector<16x16xf32>
    %189 = arith.mulf %184, %188 : vector<16x16xf32>
    %190 = arith.truncf %189 : vector<16x16xf32> to vector<16x16xbf16>
    %cst_92 = arith.constant dense<0.000000e+00> : vector<16x16xf32>
    %191 = tpu.matmul %190, %177, %cst_92 {dimension_numbers = #tpu.dot_dimension_numbers<[1], [0], [0], [1], [0, 0, 1, 1], [], []>} : vector<16x16xbf16>, vector<16x16xbf16>, vector<16x16xf32> -> vector<16x16xf32>
    %c0_93 = arith.constant 0 : index
    %c0_94 = arith.constant 0 : index
    %192 = vector.load %arg22[%c0_93, %c0_94] : memref<16x32xf32, #tpu.memory_space<vmem>>, vector<16x16xf32>
    tpu.vector_store %arg22[%c0_93, %c0_94], %191 {strides = array<i32>} : memref<16x32xf32, #tpu.memory_space<vmem>>, vector<16x16xf32>,
    %193 = vector.extract_strided_slice %174 {offsets = [0, 16], sizes = [16, 16], strides = [1, 1]} : vector<16x96xbf16> to vector<16x16xbf16>
    %194 = vector.extract_strided_slice %174 {offsets = [0, 48], sizes = [16, 16], strides = [1, 1]} : vector<16x96xbf16> to vector<16x16xbf16>
    %195 = vector.extract_strided_slice %174 {offsets = [0, 80], sizes = [16, 16], strides = [1, 1]} : vector<16x96xbf16> to vector<16x16xbf16>
    %cst_95 = arith.constant dense<0.000000e+00> : vector<16x16xf32>
    %196 = tpu.matmul %193, %194, %cst_95 {dimension_numbers = #tpu.dot_dimension_numbers<[1], [1], [0], [0], [0, 0, 1, 0], [], []>} : vector<16x16xbf16>, vector<16x16xbf16>, vector<16x16xf32> -> vector<16x16xf32>
    %197 = arith.addf %196, %32 : vector<16x16xf32>
    %cst_96 = arith.constant dense<0xFF800000> : vector<16xf32>
    %198 = vector.multi_reduction <maximumf>, %197, %cst_96 [1] : vector<16x16xf32> to vector<16xf32>
    %199 = vector.shape_cast %198 : vector<16xf32> to vector<16x1xf32>
    %200 = vector.broadcast %199 : vector<16x1xf32> to vector<16x16xf32>
    %201 = arith.subf %197, %200 : vector<16x16xf32>
    %202 = math.exp %201 : vector<16x16xf32>
    %cst_97 = arith.constant dense<0.000000e+00> : vector<16xf32>
    %203 = vector.multi_reduction <add>, %202, %cst_97 [1] : vector<16x16xf32> to vector<16xf32>
    %204 = vector.shape_cast %203 : vector<16xf32> to vector<16x1xf32>
    %205 = tpu.reciprocal %204 {approx = true} : vector<16x1xf32> -> vector<16x1xf32>
    %206 = vector.broadcast %205 : vector<16x1xf32> to vector<16x16xf32>
    %207 = arith.mulf %202, %206 : vector<16x16xf32>
    %208 = arith.truncf %207 : vector<16x16xf32> to vector<16x16xbf16>
    %cst_98 = arith.constant dense<0.000000e+00> : vector<16x16xf32>
    %209 = tpu.matmul %208, %195, %cst_98 {dimension_numbers = #tpu.dot_dimension_numbers<[1], [0], [0], [1], [0, 0, 1, 1], [], []>} : vector<16x16xbf16>, vector<16x16xbf16>, vector<16x16xf32> -> vector<16x16xf32>
    %c0_99 = arith.constant 0 : index
    %c16_100 = arith.constant 16 : index
    %210 = vector.load %arg22[%c0_99, %c16_100] : memref<16x32xf32, #tpu.memory_space<vmem>>, vector<16x16xf32>
    tpu.vector_store %arg22[%c0_99, %c16_100], %209 {strides = array<i32>} : memref<16x32xf32, #tpu.memory_space<vmem>>, vector<16x16xf32>,
    %c0_101 = arith.constant 0 : index
    %c0_102 = arith.constant 0 : index
    %211 = vector.load %arg22[%c0_101, %c0_102] : memref<16x32xf32, #tpu.memory_space<vmem>>, vector<16x32xf32>
    %212 = arith.truncf %211 : vector<16x32xf32> to vector<16x32xbf16>
    %c1_103 = arith.constant 1 : index
    %c0_104 = arith.constant 0 : index
    %c0_105 = arith.constant 0 : index
    %213 = vector.load %arg8[%c1_103, %c0_104, %c0_105] : memref<2x32x32xbf16, #tpu.memory_space<vmem>>, vector<1x32x32xbf16>
    %214 = vector.shape_cast %213 : vector<1x32x32xbf16> to vector<32x32xbf16>
    %cst_106 = arith.constant dense<0.000000e+00> : vector<16x32xf32>
    %215 = tpu.matmul %212, %214, %cst_106 {dimension_numbers = #tpu.dot_dimension_numbers<[1], [0], [0], [1], [0, 0, 1, 1], [], []>} : vector<16x32xbf16>, vector<32x32xbf16>, vector<16x32xf32> -> vector<16x32xf32>
    %c1_107 = arith.constant 1 : index
    %c0_108 = arith.constant 0 : index
    %c0_109 = arith.constant 0 : index
    %216 = vector.load %arg9[%c1_107, %c0_108, %c0_109] : memref<2x1x32xf32, #tpu.memory_space<vmem>>, vector<1x1x32xf32>
    %217 = vector.shape_cast %216 : vector<1x1x32xf32> to vector<1x32xf32>
    %218 = vector.broadcast %217 : vector<1x32xf32> to vector<16x32xf32>
    %219 = arith.addf %215, %218 : vector<16x32xf32>
    %220 = arith.addf %219, %165 : vector<16x32xf32>
    %c1_110 = arith.constant 1 : index
    %c0_111 = arith.constant 0 : index
    %c0_112 = arith.constant 0 : index
    %221 = vector.load %arg10[%c1_110, %c0_111, %c0_112] : memref<2x1x32xf32, #tpu.memory_space<vmem>>, vector<1x1x32xf32>
    %222 = vector.shape_cast %221 : vector<1x1x32xf32> to vector<1x32xf32>
    %c1_113 = arith.constant 1 : index
    %c0_114 = arith.constant 0 : index
    %c0_115 = arith.constant 0 : index
    %223 = vector.load %arg11[%c1_113, %c0_114, %c0_115] : memref<2x1x32xf32, #tpu.memory_space<vmem>>, vector<1x1x32xf32>
    %224 = vector.shape_cast %223 : vector<1x1x32xf32> to vector<1x32xf32>
    %cst_116 = arith.constant dense<0.000000e+00> : vector<16xf32>
    %225 = vector.multi_reduction <add>, %220, %cst_116 [1] : vector<16x32xf32> to vector<16xf32>
    %226 = vector.shape_cast %225 : vector<16xf32> to vector<16x1xf32>
    %cst_117 = arith.constant 3.200000e+01 : f32
    %227 = vector.broadcast %cst_117 : f32 to vector<16x1xf32>
    %228 = arith.divf %226, %227 : vector<16x1xf32>
    %229 = vector.broadcast %228 : vector<16x1xf32> to vector<16x32xf32>
    %230 = arith.subf %220, %229 : vector<16x32xf32>
    %231 = arith.mulf %230, %230 : vector<16x32xf32>
    %cst_118 = arith.constant dense<0.000000e+00> : vector<16xf32>
    %232 = vector.multi_reduction <add>, %231, %cst_118 [1] : vector<16x32xf32> to vector<16xf32>
    %233 = vector.shape_cast %232 : vector<16xf32> to vector<16x1xf32>
    %cst_119 = arith.constant 3.200000e+01 : f32
    %234 = vector.broadcast %cst_119 : f32 to vector<16x1xf32>
    %235 = arith.divf %233, %234 : vector<16x1xf32>
    %cst_120 = arith.constant 9.99999996E-13 : f32
    %236 = vector.broadcast %cst_120 : f32 to vector<16x1xf32>
    %237 = arith.addf %235, %236 : vector<16x1xf32>
    %238 = math.rsqrt %237 : vector<16x1xf32>
    %239 = vector.broadcast %238 : vector<16x1xf32> to vector<16x32xf32>
    %240 = arith.mulf %230, %239 : vector<16x32xf32>
    %241 = vector.broadcast %222 : vector<1x32xf32> to vector<16x32xf32>
    %242 = arith.mulf %240, %241 : vector<16x32xf32>
    %243 = vector.broadcast %224 : vector<1x32xf32> to vector<16x32xf32>
    %244 = arith.addf %242, %243 : vector<16x32xf32>
    %245 = arith.truncf %244 : vector<16x32xf32> to vector<16x32xbf16>
    %c1_121 = arith.constant 1 : index
    %c0_122 = arith.constant 0 : index
    %c0_123 = arith.constant 0 : index
    %246 = vector.load %arg12[%c1_121, %c0_122, %c0_123] : memref<2x32x64xbf16, #tpu.memory_space<vmem>>, vector<1x32x64xbf16>
    %247 = vector.shape_cast %246 : vector<1x32x64xbf16> to vector<32x64xbf16>
    %cst_124 = arith.constant dense<0.000000e+00> : vector<16x64xf32>
    %248 = tpu.matmul %245, %247, %cst_124 {dimension_numbers = #tpu.dot_dimension_numbers<[1], [0], [0], [1], [0, 0, 1, 1], [], []>} : vector<16x32xbf16>, vector<32x64xbf16>, vector<16x64xf32> -> vector<16x64xf32>
    %c1_125 = arith.constant 1 : index
    %c0_126 = arith.constant 0 : index
    %c0_127 = arith.constant 0 : index
    %249 = vector.load %arg13[%c1_125, %c0_126, %c0_127] : memref<2x1x64xf32, #tpu.memory_space<vmem>>, vector<1x1x64xf32>
    %250 = vector.shape_cast %249 : vector<1x1x64xf32> to vector<1x64xf32>
    %251 = vector.broadcast %250 : vector<1x64xf32> to vector<16x64xf32>
    %252 = arith.addf %248, %251 : vector<16x64xf32>
    %253 = arith.mulf %252, %252 : vector<16x64xf32>
    %254 = arith.mulf %252, %253 : vector<16x64xf32>
    %cst_128 = arith.constant 4.471500e-02 : f32
    %255 = vector.broadcast %cst_128 : f32 to vector<16x64xf32>
    %256 = arith.mulf %255, %254 : vector<16x64xf32>
    %257 = arith.addf %252, %256 : vector<16x64xf32>
    %cst_129 = arith.constant 0.797884583 : f32
    %258 = vector.broadcast %cst_129 : f32 to vector<16x64xf32>
    %259 = arith.mulf %258, %257 : vector<16x64xf32>
    %260 = math.tanh %259 : vector<16x64xf32>
    %cst_130 = arith.constant 1.000000e+00 : f32
    %261 = vector.broadcast %cst_130 : f32 to vector<16x64xf32>
    %262 = arith.addf %261, %260 : vector<16x64xf32>
    %cst_131 = arith.constant 5.000000e-01 : f32
    %263 = vector.broadcast %cst_131 : f32 to vector<16x64xf32>
    %264 = arith.mulf %263, %262 : vector<16x64xf32>
    %265 = arith.mulf %252, %264 : vector<16x64xf32>
    %266 = arith.truncf %265 : vector<16x64xf32> to vector<16x64xbf16>
    %c1_132 = arith.constant 1 : index
    %c0_133 = arith.constant 0 : index
    %c0_134 = arith.constant 0 : index
    %267 = vector.load %arg14[%c1_132, %c0_133, %c0_134] : memref<2x64x32xbf16, #tpu.memory_space<vmem>>, vector<1x64x32xbf16>
    %268 = vector.shape_cast %267 : vector<1x64x32xbf16> to vector<64x32xbf16>
    %cst_135 = arith.constant dense<0.000000e+00> : vector<16x32xf32>
    %269 = tpu.matmul %266, %268, %cst_135 {dimension_numbers = #tpu.dot_dimension_numbers<[1], [0], [0], [1], [0, 0, 1, 1], [], []>} : vector<16x64xbf16>, vector<64x32xbf16>, vector<16x32xf32> -> vector<16x32xf32>
    %c1_136 = arith.constant 1 : index
    %c0_137 = arith.constant 0 : index
    %c0_138 = arith.constant 0 : index
    %270 = vector.load %arg15[%c1_136, %c0_137, %c0_138] : memref<2x1x32xf32, #tpu.memory_space<vmem>>, vector<1x1x32xf32>
    %271 = vector.shape_cast %270 : vector<1x1x32xf32> to vector<1x32xf32>
    %272 = vector.broadcast %271 : vector<1x32xf32> to vector<16x32xf32>
    %273 = arith.addf %269, %272 : vector<16x32xf32>
    %274 = arith.addf %273, %244 : vector<16x32xf32>
    %c1_139 = arith.constant 1 : index
    %c0_140 = arith.constant 0 : index
    %c0_141 = arith.constant 0 : index
    %275 = vector.load %arg16[%c1_139, %c0_140, %c0_141] : memref<2x1x32xf32, #tpu.memory_space<vmem>>, vector<1x1x32xf32>
    %276 = vector.shape_cast %275 : vector<1x1x32xf32> to vector<1x32xf32>
    %c1_142 = arith.constant 1 : index
    %c0_143 = arith.constant 0 : index
    %c0_144 = arith.constant 0 : index
    %277 = vector.load %arg17[%c1_142, %c0_143, %c0_144] : memref<2x1x32xf32, #tpu.memory_space<vmem>>, vector<1x1x32xf32>
    %278 = vector.shape_cast %277 : vector<1x1x32xf32> to vector<1x32xf32>
    %cst_145 = arith.constant dense<0.000000e+00> : vector<16xf32>
    %279 = vector.multi_reduction <add>, %274, %cst_145 [1] : vector<16x32xf32> to vector<16xf32>
    %280 = vector.shape_cast %279 : vector<16xf32> to vector<16x1xf32>
    %cst_146 = arith.constant 3.200000e+01 : f32
    %281 = vector.broadcast %cst_146 : f32 to vector<16x1xf32>
    %282 = arith.divf %280, %281 : vector<16x1xf32>
    %283 = vector.broadcast %282 : vector<16x1xf32> to vector<16x32xf32>
    %284 = arith.subf %274, %283 : vector<16x32xf32>
    %285 = arith.mulf %284, %284 : vector<16x32xf32>
    %cst_147 = arith.constant dense<0.000000e+00> : vector<16xf32>
    %286 = vector.multi_reduction <add>, %285, %cst_147 [1] : vector<16x32xf32> to vector<16xf32>
    %287 = vector.shape_cast %286 : vector<16xf32> to vector<16x1xf32>
    %cst_148 = arith.constant 3.200000e+01 : f32
    %288 = vector.broadcast %cst_148 : f32 to vector<16x1xf32>
    %289 = arith.divf %287, %288 : vector<16x1xf32>
    %cst_149 = arith.constant 9.99999996E-13 : f32
    %290 = vector.broadcast %cst_149 : f32 to vector<16x1xf32>
    %291 = arith.addf %289, %290 : vector<16x1xf32>
    %292 = math.rsqrt %291 : vector<16x1xf32>
    %293 = vector.broadcast %292 : vector<16x1xf32> to vector<16x32xf32>
    %294 = arith.mulf %284, %293 : vector<16x32xf32>
    %295 = vector.broadcast %276 : vector<1x32xf32> to vector<16x32xf32>
    %296 = arith.mulf %294, %295 : vector<16x32xf32>
    %297 = vector.broadcast %278 : vector<1x32xf32> to vector<16x32xf32>
    %298 = arith.addf %296, %297 : vector<16x32xf32>
    %c0_150 = arith.constant 0 : index
    %c0_151 = arith.constant 0 : index
    %299 = vector.load %arg20[%c0_150, %c0_151] : memref<16x32xf32, #tpu.memory_space<vmem>>, vector<16x32xf32>
    %cst_152 = arith.constant 1.000000e-01 : f32
    %300 = vector.broadcast %cst_152 : f32 to vector<16x32xf32>
    %301 = arith.cmpf oge, %299, %300 : vector<16x32xf32>
    %302 = arith.extui %301 : vector<16x32xi1> to vector<16x32xi32>
    %303 = arith.sitofp %302 : vector<16x32xi32> to vector<16x32xf32>
    %304 = arith.mulf %298, %303 : vector<16x32xf32>
    %cst_153 = arith.constant 1.11111116 : f32
    %305 = vector.broadcast %cst_153 : f32 to vector<16x32xf32>
    %306 = arith.mulf %304, %305 : vector<16x32xf32>
    %307 = arith.truncf %306 : vector<16x32xf32> to vector<16x32xbf16>
    %c0_154 = arith.constant 0 : index
    %c0_155 = arith.constant 0 : index
    %308 = vector.load %arg18[%c0_154, %c0_155] : memref<32x128xbf16, #tpu.memory_space<vmem>>, vector<32x128xbf16>
    %cst_156 = arith.constant dense<0.000000e+00> : vector<16x128xf32>
    %309 = tpu.matmul %307, %308, %cst_156 {dimension_numbers = #tpu.dot_dimension_numbers<[1], [0], [0], [1], [0, 0, 1, 1], [], []>} : vector<16x32xbf16>, vector<32x128xbf16>, vector<16x128xf32> -> vector<16x128xf32>
    %c0_157 = arith.constant 0 : index
    %c0_158 = arith.constant 0 : index
    %310 = vector.load %arg19[%c0_157, %c0_158] : memref<1x128xf32, #tpu.memory_space<vmem>>, vector<1x128xf32>
    %311 = vector.broadcast %310 : vector<1x128xf32> to vector<16x128xf32>
    %312 = arith.addf %309, %311 : vector<16x128xf32>
    %c0_159 = arith.constant 0 : index
    %c0_160 = arith.constant 0 : index
    %313 = vector.load %arg21[%c0_159, %c0_160] : memref<16x128xf32, #tpu.memory_space<vmem>>, vector<16x128xf32>
    tpu.vector_store %arg21[%c0_159, %c0_160], %312 {strides = array<i32>} : memref<16x128xf32, #tpu.memory_space<vmem>>, vector<16x128xf32>,
    return
  }
}

</mosaic_0001>

<bundles_post_ra>
// kernel: tpu_custom_call.1
= control target key start
LH: loop header
LB: loop body
LE: loop exit
PB: predicated region body
PF: predicated region fallthrough
CT: control target
= control target key end

     0   :  { %s2639_s0 = inlined_call_operand.vmem [shape: s32[16,1], index: 0, kind: input, shape index: {}]   ;;  %s2640_s1 = inlined_call_operand.vmem [shape: f32[128,32], index: 1, kind: input, shape index: {}]   ;;  %s2641_s2 = inlined_call_operand.vmem [shape: f32[16,32], index: 2, kind: input, shape index: {}]   ;;  %s2642_s3 = inlined_call_operand.vmem [shape: f32[16,16], index: 3, kind: input, shape index: {}]   ;;  %s2643_s4 = inlined_call_operand.vmem [shape: f32[1,32], index: 4, kind: input, shape index: {}]   ;;  %s2644_s5 = inlined_call_operand.vmem [shape: f32[1,32], index: 5, kind: input, shape index: {}]   ;;  %s2645_s6 = inlined_call_operand.vmem [shape: bf16[2,32,96], index: 6, kind: input, shape index: {}]   ;;  %s2646_s7 = inlined_call_operand.vmem [shape: f32[2,1,96], index: 7, kind: input, shape index: {}]   ;;  %s2647_s8 = inlined_call_operand.vmem [shape: bf16[2,32,32], index: 8, kind: input, shape index: {}]   ;;  %s2648_s9 = inlined_call_operand.vmem [shape: f32[2,1,32], index: 9, kind: input, shape index: {}]   ;;  %s2649_s10 = inlined_call_operand.vmem [shape: f32[2,1,32], index: 10, kind: input, shape index: {}]   ;;  %s2650_s11 = inlined_call_operand.vmem [shape: f32[2,1,32], index: 11, kind: input, shape index: {}]   ;;  %s2651_s12 = inlined_call_operand.vmem [shape: bf16[2,32,64], index: 12, kind: input, shape index: {}]   ;;  %s2652_s13 = inlined_call_operand.vmem [shape: f32[2,1,64], index: 13, kind: input, shape index: {}]   ;;  %s2653_s14 = inlined_call_operand.vmem [shape: bf16[2,64,32], index: 14, kind: input, shape index: {}]   ;;  %s2654_s15 = inlined_call_operand.vmem [shape: f32[2,1,32], index: 15, kind: input, shape index: {}]   ;;  %s2655_s16 = inlined_call_operand.vmem [shape: f32[2,1,32], index: 16, kind: input, shape index: {}]   ;;  %s2656_s17 = inlined_call_operand.vmem [shape: f32[2,1,32], index: 17, kind: input, shape index: {}]   ;;  %s2657_s18 = inlined_call_operand.vmem [shape: bf16[32,128], index: 18, kind: input, shape index: {}]   ;;  %s2658_s19 = inlined_call_operand.vmem [shape: f32[1,128], index: 19, kind: input, shape index: {}]   ;;  %s2659_s20 = inlined_call_operand.vmem [shape: f32[16,32], index: 20, kind: input, shape index: {}]   ;;  %s2660_s21 = inlined_call_operand.hbm [shape: f32[16,128], index: 21, kind: output, shape index: {}]  }
   0x1   :  { %2666 = sst [smem:[#allocation6_spill]] %s2639_s0 }
   0x2   :  { %2667 = sst [smem:[#allocation7_spill]] %s2640_s1 }
   0x3   :  { %2668 = sst [smem:[#allocation8_spill]] %s2641_s2 }
   0x4   :  { %2669 = sst [smem:[#allocation9_spill]] %s2642_s3 }
   0x5   :  { %2670 = sst [smem:[#allocation10_spill]] %s2643_s4 }
   0x6   :  { %2671 = sst [smem:[#allocation11_spill]] %s2644_s5 }
   0x7   :  { %2672 = sst [smem:[#allocation12_spill]] %s2655_s16 }
   0x8   :  { %s2673_s26 = sld [smem:[#allocation6_spill]]  ;;  %s2674_s16 = sld [smem:[#allocation7_spill]]  ;;  %v2120_v2 = vmov 0  }
   0x9   :  { %2013 = vset.pattern.permute.xlu0 %v2120_v2 }
   0xe   :  { %v72_v0 = vld [vmem:[%s2673_s26] sm:$0xff]  ;;  %v87_v3 = vld [vmem:[%s2674_s16 + $0x8] sm:$0xff]  ;;  %v88_v4 = vld [vmem:[%s2674_s16 + $0x10] sm:$0xff] }
   0xf   :  { %v86_v1 = vld [vmem:[%s2674_s16] sm:$0xff]  ;;  %v89_v5 = vld [vmem:[%s2674_s16 + $0x18] sm:$0xff]  ;;  %75 = vperm.xlu0 %2013, %v72_v0   ;;  %v73_v8 = vld [vmem:[%s2673_s26 + $0x8] sm:$0xff] }
  0x10   :  { %v1968_v6 = vpack.c.bf16 %v87_v3, %v86_v1  ;;  %v1972_v7 = vpack.c.bf16 %v89_v5, %v88_v4  ;;  %v90_v9 = vld [vmem:[%s2674_s16 + $0x20] sm:$0xff]  ;;  %v91_v10 = vld [vmem:[%s2674_s16 + $0x28] sm:$0xff]  ;;  %v92_v11 = vld [vmem:[%s2674_s16 + $0x30] sm:$0xff] }
  0x11   :  { %v1976_v12 = vpack.c.bf16 %v91_v10, %v90_v9  ;;  %v93_v13 = vld [vmem:[%s2674_s16 + $0x38] sm:$0xff]  ;;  %v94_v14 = vld [vmem:[%s2674_s16 + $0x40] sm:$0xff]  ;;  %v95_v15 = vld [vmem:[%s2674_s16 + $0x48] sm:$0xff] }
  0x12   :  { %1969 = vmatprep.subr.bf16.mxu0 %v1968_v6  ;;  %v1980_v16 = vpack.c.bf16 %v93_v13, %v92_v11  ;;  %v96_v17 = vld [vmem:[%s2674_s16 + $0x50] sm:$0xff]  ;;  %v97_v18 = vld [vmem:[%s2674_s16 + $0x58] sm:$0xff]  ;;  %v1984_v19 = vpack.c.bf16 %v95_v15, %v94_v14  ;;  %v98_v20 = vld [vmem:[%s2674_s16 + $0x60] sm:$0xff] }
  0x13   :  { %1971 = vmatpush3.bf16.msra.mxu0 %v1968_v6  ;;  %78 = vperm.xlu0 %2013, %v73_v8   ;;  %v99_v21 = vld [vmem:[%s2674_s16 + $0x68] sm:$0xff]  ;;  %v1988_v22 = vpack.c.bf16 %v97_v18, %v96_v17 }
  0x14   :  { %1973 = vmatprep.subr.bf16.mxu0 %v1972_v7 }
  0x17   :  { %1975 = vmatpush3.bf16.msra.mxu0 %v1972_v7 }
  0x18   :  { %1977 = vmatprep.subr.bf16.mxu0 %v1976_v12 }
  0x1b   :  { %1979 = vmatpush3.bf16.msra.mxu0 %v1976_v12 }
  0x1c   :  { %1981 = vmatprep.subr.bf16.mxu0 %v1980_v16 }
  0x1f   :  { %1983 = vmatpush3.bf16.msra.mxu0 %v1980_v16 }
  0x20   :  { %1985 = vmatprep.subr.bf16.mxu0 %v1984_v19 }
  0x23   :  { %1987 = vmatpush3.bf16.msra.mxu0 %v1984_v19 }
  0x24   :  { %26 = vsyncpa [#allocation4], 0  ;;  %1989 = vmatprep.subr.bf16.mxu0 %v1988_v22  ;;  %v1992_v23 = vpack.c.bf16 %v99_v21, %v98_v20  ;;  %v100_v24 = vld [vmem:[%s2674_s16 + $0x70] sm:$0xff]  ;;  %v101_v25 = vld [vmem:[%s2674_s16 + $0x78] sm:$0xff]  ;;  %v70_v27 = vlaneseq  ;;  %v2121_v30 = vmov 1.0   ;;  %s2675_s30 = sld [smem:[#allocation8_spill]] }
  0x25   :  { %v1996_v26 = vpack.c.bf16 %v101_v25, %v100_v24  ;;  %vm181_vm2 = vcmask 261120   ;;  %v2014_v50 = vld [vmem:[%s2645_s6] sm:$0xff]   ;;  %v2122_v51 = vmov 0.0   ;;  %v2015_v52 = vld [vmem:[%s2645_s6 + $0x8] sm:$0xff]   ;;  %vm2123_vm3 = vmmov 0   ;;  %s2676_s27 = sld [smem:[#allocation10_spill]] }
  0x26   :  { %v71_v28 = vand.u32 127, %v70_v27  ;;  %1840 = vmatprep.subr.bf16.mxu1 %v2122_v51  ;;  %1844 = vmatprep.mubr.msk.bf16.mxu1 %vm2123_vm3, %v2122_v51  ;;  %s2677_s29 = sld [smem:[#allocation11_spill]]  ;;  %v1654_v6 = vld [vmem:[%s2646_s7] ss:$0 sm:$0xff]  ;;  %s2124_s4 = smov 96   ;;  %vm299_vm4 = vcmask 130048  }
  0x27   :  { %1991 = vmatpush3.bf16.msra.mxu0 %v1988_v22  ;;  %1841 = vmatpush3.bf16.msra.mxu1 %v2014_v50  ;;  %s2678_s5 = sld [smem:[#allocation9_spill]]  ;;  %s2125_s1 = smov 80   ;;  %vm548_vm5 = vcmask 261248   ;;  %vm793_vm6 = vcmask 523264  }
  0x28   :  { %1993 = vmatprep.subr.bf16.mxu0 %v1992_v23  ;;  %1842 = vmatprep.subr.bf16.mxu1 %v2122_v51  ;;  %s2126_s24 = smov 64   ;;  %s2127_s2 = smov 112  }
  0x29   :  { %s2128_s25 = smov 48   ;;  %s2129_s26 = smov 16  }
  0x2a   :  { %v102_v32 = vld [vmem:[%s2675_s30] sm:$0xff]  ;;  %v103_v34 = vld [vmem:[%s2675_s30 + $0x8] sm:$0xff]  ;;  %s2679_s28 = sld [smem:[#allocation12_spill]] }
  0x2b   :  { %1995 = vmatpush3.bf16.msra.mxu0 %v1992_v23  ;;  %1843 = vmatpush3.bf16.msra.mxu1 %v2015_v52  ;;  %v1652_v61 = vld [vmem:[%s2676_s27] ss:$0 sm:$0xff] }
  0x2c   :  { %1997 = vmatprep.subr.bf16.mxu0 %v1996_v26  ;;  %1848 = vmatprep.subr.bf16.mxu1 %v2122_v51  ;;  %v1653_v1 = vld [vmem:[%s2677_s29] ss:$0 sm:$0xff] }
  0x2d   :  { %v2352_v16 = vld [vmem:[%s2678_s5] sm:$0xff]  ;;  %v2357_v18 = vld [vmem:[%s2678_s5 + $0x8] sm:$0xff] }
  0x2f   :  { %1999 = vmatpush3.bf16.msra.mxu0 %v1996_v26 }
  0x30   :  { %1866 = vmatprep.subr.bf16.mxu0 %v2122_v51 }
  0x8e   :  { %v76_v29 = vpop.permute.xlu0 %75 }
  0x8f   :  { %vm80_vm0 = vcmp.eq.s32.totalorder %v71_v28, %v76_v29 }
  0x90   :  { %1837 = vmatprep.mubr.msk.f32.mxu0 %vm80_vm0, %v2121_v30 }
  0x92   :  { %v79_v31 = vpop.permute.xlu0 %78 }
  0x93   :  { %vm81_vm1 = vcmp.eq.s32.totalorder %v71_v28, %v79_v31 }
  0x94   :  { %1838 = vmatmul.mubr.msk.f32.vlgmr.msra.gmra.mrb[0].mxu0 %vm81_vm1, %v2121_v30 }
  0x95   :  { %1868 = vmatprep.mubr.msk.bf16.mxu0 %vm2123_vm3, %v2122_v51 }
 0x167   :  { %v1839_v33 = vpop.f32.mrb[0].mxu0 }
 0x168   :  { %v170_v35 = vpop.f32.mrb[1].mxu0  ;;  %v176_v37 = vadd.f32 %v1839_v33, %v103_v34 }
 0x169   :  { %v171_v36 = vadd.f32 %v170_v35, %v102_v32 }
 0x16a   :  { %v185_v39 = vsel %vm181_vm2, %v176_v37, 0.0 }
 0x16b   :  { %v182_v38 = vsel %vm181_vm2, %v171_v36, 0.0 }
 0x16c   :  { %183 = vadd.xlane.f32.xlu1 %v182_v38 }
 0x170   :  { %186 = vadd.xlane.f32.xlu1 %v185_v39 }
 0x1f9   :  { %v184_v40 = vpop.xlane.xlu1 %183 }
 0x1fa   :  { %v189_v41 = vmul.f32 0.03125, %v184_v40 }
 0x1fc   :  { %v191_v42 = vsub.f32 %v171_v36, %v189_v41 }
 0x1fd   :  { %v187_v43 = vpop.xlane.xlu1 %186 }
 0x1fe   :  { %v190_v44 = vmul.f32 0.03125, %v187_v43  ;;  %v193_v45 = vmul.f32 %v191_v42, %v191_v42 }
 0x200   :  { %v192_v46 = vsub.f32 %v176_v37, %v190_v44  ;;  %v195_v47 = vsel %vm181_vm2, %v193_v45, 0.0 }
 0x201   :  { %196 = vadd.xlane.f32.xlu0 %v195_v47 }
 0x202   :  { %v194_v48 = vmul.f32 %v192_v46, %v192_v46 }
 0x204   :  { %v198_v49 = vsel %vm181_vm2, %v194_v48, 0.0 }
 0x205   :  { %199 = vadd.xlane.f32.xlu1 %v198_v49 }
 0x28e   :  { %v197_v53 = vpop.xlane.xlu0 %196 }
 0x28f   :  { %v201_v54 = vmul.f32 0.03125, %v197_v53 }
 0x291   :  { %v203_v55 = vadd.f32 1e-12, %v201_v54 }
 0x292   :  { %v200_v56 = vpop.xlane.xlu1 %199 }
 0x293   :  { %2036 = vrsqrt.f32 %v203_v55  ;;  %v202_v57 = vmul.f32 0.03125, %v200_v56 }
 0x295   :  { %v204_v58 = vadd.f32 1e-12, %v202_v57 }
 0x297   :  { %2038 = vrsqrt.f32 %v204_v58 }
 0x29d   :  { %v2037_v59 = vpop.eup %2036 }
 0x29e   :  { %v207_v60 = vmul.f32 %v2037_v59, %v191_v42 }
 0x2a0   :  { %v215_v0 = vmul.f32 %v1652_v61, %v207_v60 }
 0x2a1   :  { %v2039_v62 = vpop.eup %2038 }
 0x2a2   :  { %v208_v63 = vmul.f32 %v2039_v62, %v192_v46  ;;  %v2327_v3 = vadd.f32 %v1653_v1, %v215_v0 }
 0x2a4   :  { %v216_v2 = vmul.f32 %v1652_v61, %v208_v63 }
 0x2a6   :  { %v2329_v4 = vadd.f32 %v1653_v1, %v216_v2 }
 0x2a8   :  { %v227_v5 = vpack.c.bf16 %v2329_v4, %v2327_v3 }
 0x2aa   :  { %1845 = vmatmul.mubr.msk.bf16.vlgmr.msra.gmra.mrb[0].mxu1 %vm181_vm2, %v227_v5 }
 0x2ab   :  { %1850 = vmatprep.mubr.msk.bf16.mxu1 %vm2123_vm3, %v2122_v51 }
 0x37d   :  { %v288_v7 = vpop.f32.mrb[0].mxu1 }
 0x37e   :  { %v1846_v8 = vpop.f32.mrb[1].mxu1  ;;  %v289_v10 = vadd.f32 %v1654_v6, %v288_v7 }
 0x37f   :  { %v291_v9 = vpop.f32.mrb[2].mxu1 }
 0x380   :  { %v292_v11 = vadd.f32 %v1654_v6, %v291_v9  ;;  %v1847_v12 = vpop.f32.mrb[3].mxu1 }
 0x382   :  { %v2339_v13 = vpack.c.bf16 %v292_v11, %v289_v10 }
 0x384   :  { %297 = vrot.lane.b32.xlu1 %v2339_v13, %s2124_s4 }
 0x3f6   :  { %v298_v14 = vpop.permute.xlu1 %297 }
 0x3f7   :  { %v304_v15 = vsel %vm299_vm4, %v298_v14, 0 }
 0x3f8   :  { %1849 = vmatpush3.bf16.xpose.msra.mxu1 %v304_v15 }
 0x3f9   :  { %1854 = vmatprep.subr.bf16.mxu1 %v2122_v51 }
 0x3ff   :  { %1851 = vmatmul.mubr.msk.bf16.vlgmr.msra.gmra.mrb[4].mxu1 %vm299_vm4, %v2339_v13 }
 0x400   :  { %1856 = vmatprep.mubr.msk.bf16.mxu1 %vm2123_vm3, %v2122_v51 }
 0x4d2   :  { %v340_v17 = vpop.f32.mrb[4].mxu1 }
 0x4d3   :  { %v341_v19 = vadd.f32 %v340_v17, %v2352_v16  ;;  %v1852_v20 = vpop.f32.mrb[5].mxu1 }
 0x4d4   :  { %v343_v21 = vpop.f32.mrb[6].mxu1 }
 0x4d5   :  { %v344_v22 = vadd.f32 %v343_v21, %v2357_v18  ;;  %v1853_v23 = vpop.f32.mrb[7].mxu1  ;;  %v347_v24 = vsel %vm299_vm4, %v341_v19, -inf }
 0x4d6   :  { %348 = vmax.xlane.f32.xlu1 %v347_v24 }
 0x4d7   :  { %v350_v25 = vsel %vm299_vm4, %v344_v22, -inf }
 0x4d8   :  { %351 = vmax.xlane.f32.xlu0 %v350_v25 }
 0x4e7   :  { %421 = vrot.lane.b32.xlu1 %v2339_v13, %s2125_s1 }
 0x563   :  { %v349_v26 = vpop.xlane.xlu1 %348 }
 0x564   :  { %v353_v27 = vsub.f32 %v341_v19, %v349_v26  ;;  %v2017_v19 = vld [vmem:[%s2647_s8 + $0x8] sm:$0xff]  }
 0x565   :  { %v352_v28 = vpop.xlane.xlu0 %351 }
 0x566   :  { %v355_v29 = vmul.f32 1.442695, %v353_v27  ;;  %v354_v30 = vsub.f32 %v344_v22, %v352_v28 }
 0x567   :  { %v422_v43 = vpop.permute.xlu1 %421 }
 0x568   :  { %2040 = vpow2.f32 %v355_v29  ;;  %v357_v31 = vmul.f32 1.442695, %v354_v30  ;;  %v427_v45 = vsel %vm299_vm4, %v422_v43, 0  ;;  %v1662_v29 = vld [vmem:[%s2648_s9] ss:$0 sm:$0xff] }
 0x56a   :  { %2042 = vpow2.f32 %v357_v31 }
 0x572   :  { %v2041_v32 = vpop.eup %2040 }
 0x573   :  { %v359_v33 = vsel %vm299_vm4, %v2041_v32, 0.0 }
 0x574   :  { %v2043_v34 = vpop.eup %2042  ;;  %360 = vadd.xlane.f32.xlu0 %v359_v33 }
 0x575   :  { %v362_v35 = vsel %vm299_vm4, %v2043_v34, 0.0 }
 0x578   :  { %363 = vadd.xlane.f32.xlu0 %v362_v35 }
 0x58e   :  { %370 = vrot.lane.b32.xlu0 %v2339_v13, %s2126_s24 }
 0x592   :  { %419 = vrot.lane.b32.xlu0 %v2339_v13, %s2127_s2 }
 0x601   :  { %v361_v36 = vpop.xlane.xlu0 %360 }
 0x602   :  { %2044 = vrcp.f32 %v361_v36 }
 0x605   :  { %v364_v37 = vpop.xlane.xlu0 %363 }
 0x606   :  { %2046 = vrcp.f32 %v364_v37 }
 0x609   :  { %v371_v38 = vpop.permute.xlu0 %370 }
 0x60a   :  { %1855 = vmatpush3.bf16.msra.mxu1 %v371_v38 }
 0x60b   :  { %1860 = vmatprep.subr.bf16.mxu1 %v2122_v51 }
 0x60c   :  { %v2045_v39 = vpop.eup %2044 }
 0x60d   :  { %v367_v41 = vmul.f32 %v2045_v39, %v2041_v32  ;;  %v420_v46 = vpop.permute.xlu0 %419 }
 0x610   :  { %v2047_v40 = vpop.eup %2046 }
 0x611   :  { %v368_v42 = vmul.f32 %v2047_v40, %v2043_v34 }
 0x613   :  { %v369_v44 = vpack.c.bf16 %v368_v42, %v367_v41 }
 0x615   :  { %1857 = vmatmul.mubr.msk.bf16.vlgmr.msra.gmra.mrb[8].mxu1 %vm299_vm4, %v369_v44 }
 0x616   :  { %1861 = vmatpush3.bf16.xpose.msra.mxu1 %v427_v45  ;;  %1862 = vmatprep.mubr.msk.bf16.mxu1 %vm2123_vm3, %v2122_v51 }
 0x617   :  { %1872 = vmatprep.subr.bf16.mxu1 %v2122_v51 }
 0x61d   :  { %1863 = vmatmul.mubr.msk.bf16.vlgmr.msra.gmra.mrb[12].mxu1 %vm299_vm4, %v420_v46 }
 0x61e   :  { %1876 = vmatprep.mubr.msk.bf16.mxu1 %vm2123_vm3, %v2122_v51 }
 0x6e8   :  { %v410_v47 = vpop.f32.mrb[8].mxu1 }
 0x6e9   :  { %417 = vst.msk [vmem:[#allocation2] sm:$0xff] %vm299_vm4, %v410_v47  ;;  %v1858_v48 = vpop.f32.mrb[9].mxu1 }
 0x6ea   :  { %v413_v49 = vpop.f32.mrb[10].mxu1 }
 0x6eb   :  { %418 = vst.msk [vmem:[#allocation2 + $0x8] sm:$0xff] %vm299_vm4, %v413_v49  ;;  %v1859_v50 = vpop.f32.mrb[11].mxu1  ;;  %v2019_v49 = vld [vmem:[%s2651_s12 + $0x8] sm:$0xff]  }
 0x6f0   :  { %v463_v52 = vpop.f32.mrb[12].mxu1 }
 0x6f1   :  { %v464_v53 = vadd.f32 %v463_v52, %v2352_v16  ;;  %v1864_v54 = vpop.f32.mrb[13].mxu1 }
 0x6f2   :  { %v466_v55 = vpop.f32.mrb[14].mxu1 }
 0x6f3   :  { %v467_v56 = vadd.f32 %v466_v55, %v2357_v18  ;;  %v1865_v57 = vpop.f32.mrb[15].mxu1  ;;  %v470_v58 = vsel %vm299_vm4, %v464_v53, -inf }
 0x6f4   :  { %471 = vmax.xlane.f32.xlu0 %v470_v58 }
 0x6f5   :  { %v473_v59 = vsel %vm299_vm4, %v467_v56, -inf }
 0x6f6   :  { %474 = vmax.xlane.f32.xlu1 %v473_v59  ;;  %v1666_v59 = vld [vmem:[%s2649_s10] ss:$0 sm:$0xff] }
 0x781   :  { %v472_v60 = vpop.xlane.xlu0 %471 }
 0x782   :  { %v476_v61 = vsub.f32 %v464_v53, %v472_v60 }
 0x783   :  { %v475_v62 = vpop.xlane.xlu1 %474 }
 0x784   :  { %v478_v63 = vmul.f32 1.442695, %v476_v61  ;;  %v477_v0 = vsub.f32 %v467_v56, %v475_v62 }
 0x786   :  { %2048 = vpow2.f32 %v478_v63  ;;  %v480_v1 = vmul.f32 1.442695, %v477_v0  ;;  %v1667_v63 = vld [vmem:[%s2650_s11] ss:$0 sm:$0xff] }
 0x788   :  { %2050 = vpow2.f32 %v480_v1 }
 0x790   :  { %v2049_v2 = vpop.eup %2048 }
 0x791   :  { %v482_v5 = vsel %vm299_vm4, %v2049_v2, 0.0 }
 0x792   :  { %v2051_v6 = vpop.eup %2050  ;;  %483 = vadd.xlane.f32.xlu0 %v482_v5 }
 0x793   :  { %v485_v7 = vsel %vm299_vm4, %v2051_v6, 0.0 }
 0x796   :  { %486 = vadd.xlane.f32.xlu0 %v485_v7  ;;  %v2021_v7 = vld [vmem:[%s2653_s14 + $0x8] sm:$0xff]  }
 0x7ac   :  { %493 = vrot.lane.b32.xlu0 %v2339_v13, %s2128_s25  ;;  %v2016_v13 = vld [vmem:[%s2647_s8] sm:$0xff]  }
 0x7ad   :  { %1873 = vmatpush3.bf16.msra.mxu1 %v2016_v13 }
 0x7ae   :  { %1874 = vmatprep.subr.bf16.mxu1 %v2122_v51 }
 0x7b1   :  { %1875 = vmatpush3.bf16.msra.mxu1 %v2017_v19 }
 0x7b2   :  { %1888 = vmatprep.subr.bf16.mxu1 %v2122_v51 }
 0x81f   :  { %v484_v8 = vpop.xlane.xlu0 %483 }
 0x820   :  { %2052 = vrcp.f32 %v484_v8  ;;  %v2022_v8 = vld [vmem:[%s2653_s14 + $0x10] sm:$0xff]  }
 0x823   :  { %v487_v9 = vpop.xlane.xlu0 %486 }
 0x824   :  { %2054 = vrcp.f32 %v487_v9  ;;  %v2023_v9 = vld [vmem:[%s2653_s14 + $0x18] sm:$0xff]  }
 0x827   :  { %v494_v10 = vpop.permute.xlu0 %493 }
 0x828   :  { %1867 = vmatpush3.bf16.msra.mxu0 %v494_v10  ;;  %v1668_v10 = vld [vmem:[%s2652_s13] ss:$0 sm:$0xff] }
 0x829   :  { %1880 = vmatprep.subr.bf16.mxu0 %v2122_v51 }
 0x82a   :  { %v2053_v11 = vpop.eup %2052 }
 0x82b   :  { %v490_v14 = vmul.f32 %v2053_v11, %v2049_v2 }
 0x82e   :  { %v2055_v12 = vpop.eup %2054 }
 0x82f   :  { %v491_v15 = vmul.f32 %v2055_v12, %v2051_v6  ;;  %v2020_v6 = vld [vmem:[%s2653_s14] sm:$0xff]  }
 0x831   :  { %v492_v17 = vpack.c.bf16 %v491_v15, %v490_v14 }
 0x833   :  { %1869 = vmatmul.mubr.msk.bf16.vlgmr.msra.gmra.mrb[4].mxu0 %vm299_vm4, %v492_v17 }
 0x834   :  { %1884 = vmatprep.mubr.msk.bf16.mxu0 %vm2123_vm3, %v2122_v51 }
 0x906   :  { %v533_v20 = vpop.f32.mrb[4].mxu0 }
 0x907   :  { %542 = vrot.lane.b32.xlu1 %v533_v20, %s2129_s26  ;;  %v1870_v21 = vpop.f32.mrb[5].mxu0 }
 0x908   :  { %v536_v22 = vpop.f32.mrb[6].mxu0 }
 0x909   :  { %v1871_v23 = vpop.f32.mrb[7].mxu0 }
 0x90b   :  { %544 = vrot.lane.b32.xlu1 %v536_v22, %s2129_s26 }
 0x979   :  { %v543_v24 = vpop.permute.xlu1 %542 }
 0x97a   :  { %549 = vst.msk [vmem:[#allocation2] sm:$0xff] %vm548_vm5, %v543_v24 }
 0x97d   :  { %v545_v25 = vpop.permute.xlu1 %544 }
 0x97e   :  { %550 = vst.msk [vmem:[#allocation2 + $0x8] sm:$0xff] %vm548_vm5, %v545_v25 }
 0x981   :  { %v551_v26 = vld [vmem:[#allocation2] sm:$0xff] }
 0x985   :  { %v552_v27 = vld [vmem:[#allocation2 + $0x8] sm:$0xff] }
 0x986   :  { %v553_v28 = vpack.c.bf16 %v552_v27, %v551_v26 }
 0x988   :  { %1877 = vmatmul.mubr.msk.bf16.vlgmr.msra.gmra.mrb[16].mxu1 %vm181_vm2, %v553_v28 }
 0x989   :  { %1896 = vmatprep.mubr.msk.bf16.mxu1 %vm2123_vm3, %v2122_v51  ;;  %1889 = vmatpush3.bf16.msra.mxu1 %v2020_v6 }
 0x98a   :  { %1890 = vmatprep.subr.bf16.mxu1 %v2122_v51 }
 0x98d   :  { %1891 = vmatpush3.bf16.msra.mxu1 %v2021_v7 }
 0x98e   :  { %1892 = vmatprep.subr.bf16.mxu1 %v2122_v51 }
 0x991   :  { %1893 = vmatpush3.bf16.msra.mxu1 %v2022_v8 }
 0x992   :  { %1894 = vmatprep.subr.bf16.mxu1 %v2122_v51 }
 0x995   :  { %1895 = vmatpush3.bf16.msra.mxu1 %v2023_v9 }
 0x996   :  { %1914 = vmatprep.subr.bf16.mxu1 %v2122_v51 }
 0xa5b   :  { %v614_v30 = vpop.f32.mrb[16].mxu1 }
 0xa5c   :  { %v615_v31 = vadd.f32 %v1662_v29, %v614_v30  ;;  %v1878_v32 = vpop.f32.mrb[17].mxu1 }
 0xa5d   :  { %v617_v33 = vpop.f32.mrb[18].mxu1 }
 0xa5e   :  { %v618_v34 = vadd.f32 %v1662_v29, %v617_v33  ;;  %v1879_v35 = vpop.f32.mrb[19].mxu1  ;;  %v621_v36 = vadd.f32 %v615_v31, %v2327_v3 }
 0xa60   :  { %v625_v37 = vsel %vm181_vm2, %v621_v36, 0.0  ;;  %v622_v38 = vadd.f32 %v618_v34, %v2329_v4  ;;  %v2018_v4 = vld [vmem:[%s2651_s12] sm:$0xff]  }
 0xa61   :  { %626 = vadd.xlane.f32.xlu0 %v625_v37  ;;  %1881 = vmatpush3.bf16.msra.mxu0 %v2018_v4 }
 0xa62   :  { %v628_v39 = vsel %vm181_vm2, %v622_v38, 0.0  ;;  %1882 = vmatprep.subr.bf16.mxu0 %v2122_v51 }
 0xa63   :  { %629 = vadd.xlane.f32.xlu1 %v628_v39 }
 0xa65   :  { %1883 = vmatpush3.bf16.msra.mxu0 %v2019_v49 }
 0xa66   :  { %1900 = vmatprep.subr.bf16.mxu0 %v2122_v51 }
 0xaee   :  { %v627_v40 = vpop.xlane.xlu0 %626 }
 0xaef   :  { %v631_v41 = vmul.f32 0.03125, %v627_v40 }
 0xaf0   :  { %v630_v42 = vpop.xlane.xlu1 %629 }
 0xaf1   :  { %v633_v43 = vsub.f32 %v621_v36, %v631_v41  ;;  %v632_v44 = vmul.f32 0.03125, %v630_v42 }
 0xaf3   :  { %v634_v45 = vsub.f32 %v622_v38, %v632_v44  ;;  %v635_v46 = vmul.f32 %v633_v43, %v633_v43  ;;  %v1672_v38 = vld [vmem:[%s2654_s15] ss:$0 sm:$0xff] }
 0xaf5   :  { %v637_v47 = vsel %vm181_vm2, %v635_v46, 0.0  ;;  %v636_v48 = vmul.f32 %v634_v45, %v634_v45 }
 0xaf6   :  { %638 = vadd.xlane.f32.xlu0 %v637_v47 }
 0xaf7   :  { %v640_v3 = vsel %vm181_vm2, %v636_v48, 0.0 }
 0xafa   :  { %641 = vadd.xlane.f32.xlu0 %v640_v3 }
 0xb83   :  { %v639_v50 = vpop.xlane.xlu0 %638 }
 0xb84   :  { %v643_v52 = vmul.f32 0.03125, %v639_v50 }
 0xb86   :  { %v645_v53 = vadd.f32 1e-12, %v643_v52 }
 0xb87   :  { %v642_v54 = vpop.xlane.xlu0 %641 }
 0xb88   :  { %2056 = vrsqrt.f32 %v645_v53  ;;  %v644_v55 = vmul.f32 0.03125, %v642_v54 }
 0xb8a   :  { %v646_v56 = vadd.f32 1e-12, %v644_v55 }
 0xb8c   :  { %2058 = vrsqrt.f32 %v646_v56 }
 0xb92   :  { %v2057_v57 = vpop.eup %2056 }
 0xb93   :  { %v649_v58 = vmul.f32 %v2057_v57, %v633_v43 }
 0xb95   :  { %v657_v61 = vmul.f32 %v1666_v59, %v649_v58  ;;  %v2024_v58 = vld [vmem:[%s2645_s6 + $0x10] sm:$0xff]  }
 0xb96   :  { %v2059_v60 = vpop.eup %2058 }
 0xb97   :  { %v650_v62 = vmul.f32 %v2059_v60, %v634_v45  ;;  %v665_v1 = vadd.f32 %v1667_v63, %v657_v61 }
 0xb99   :  { %v658_v0 = vmul.f32 %v1666_v59, %v650_v62  ;;  %v2025_v59 = vld [vmem:[%s2645_s6 + $0x18] sm:$0xff]  }
 0xb9b   :  { %v666_v2 = vadd.f32 %v1667_v63, %v658_v0 }
 0xb9d   :  { %v667_v5 = vpack.c.bf16 %v666_v2, %v665_v1 }
 0xb9f   :  { %1885 = vmatmul.mubr.msk.bf16.vlgmr.msra.gmra.mrb[8].mxu0 %vm181_vm2, %v667_v5  ;;  %v1678_v5 = vld [vmem:[%s2679_s28] ss:$0 sm:$0xff] }
 0xba0   :  { %1904 = vmatprep.mubr.msk.bf16.mxu0 %vm2123_vm3, %v2122_v51  ;;  %1901 = vmatpush3.bf16.msra.mxu0 %v2024_v58 }
 0xba1   :  { %1902 = vmatprep.subr.bf16.mxu0 %v2122_v51 }
 0xba4   :  { %1903 = vmatpush3.bf16.msra.mxu0 %v2025_v59 }
 0xba5   :  { %1908 = vmatprep.subr.bf16.mxu0 %v2122_v51 }
 0xc72   :  { %v728_v11 = vpop.f32.mrb[8].mxu0 }
 0xc73   :  { %v729_v12 = vadd.f32 %v1668_v10, %v728_v11  ;;  %v1886_v14 = vpop.f32.mrb[9].mxu0 }
 0xc74   :  { %v731_v15 = vpop.f32.mrb[10].mxu0 }
 0xc75   :  { %v735_v17 = vmul.f32 %v729_v12, %v729_v12  ;;  %v732_v13 = vadd.f32 %v1668_v10, %v731_v15  ;;  %v1887_v19 = vpop.f32.mrb[11].mxu0  ;;  %v1679_v10 = vld [vmem:[%s2656_s17] ss:$0 sm:$0xff] }
 0xc77   :  { %v737_v20 = vmul.f32 %v735_v17, %v729_v12  ;;  %v736_v21 = vmul.f32 %v732_v13, %v732_v13  ;;  %v1685_v17 = vld [vmem:[%s2646_s7 + $0x1] ss:$0 sm:$0xff] }
 0xc79   :  { %v739_v22 = vmul.f32 0.044715, %v737_v20  ;;  %v738_v23 = vmul.f32 %v736_v21, %v732_v13 }
 0xc7b   :  { %v741_v24 = vadd.f32 %v739_v22, %v729_v12  ;;  %v740_v25 = vmul.f32 0.044715, %v738_v23 }
 0xc7d   :  { %v743_v26 = vmul.f32 0.7978846, %v741_v24  ;;  %v742_v27 = vadd.f32 %v740_v25, %v732_v13 }
 0xc7f   :  { %2060 = vtanh.f32 %v743_v26  ;;  %v744_v28 = vmul.f32 0.7978846, %v742_v27 }
 0xc81   :  { %2062 = vtanh.f32 %v744_v28 }
 0xc89   :  { %v2061_v29 = vpop.eup %2060 }
 0xc8a   :  { %v747_v30 = vadd.f32 1.0, %v2061_v29 }
 0xc8b   :  { %v2063_v31 = vpop.eup %2062 }
 0xc8c   :  { %v749_v32 = vmul.f32 0.5, %v747_v30  ;;  %v748_v33 = vadd.f32 1.0, %v2063_v31 }
 0xc8e   :  { %v750_v34 = vmul.f32 0.5, %v748_v33  ;;  %v751_v35 = vmul.f32 %v749_v32, %v729_v12 }
 0xc90   :  { %v752_v36 = vmul.f32 %v750_v34, %v732_v13 }
 0xc92   :  { %v753_v37 = vpack.c.bf16 %v752_v36, %v751_v35 }
 0xc94   :  { %1897 = vmatmul.mubr.msk.bf16.vlgmr.msra.gmra.mrb[20].mxu1 %vm793_vm6, %v753_v37 }
 0xc95   :  { %1916 = vmatprep.mubr.msk.bf16.mxu1 %vm2123_vm3, %v2122_v51 }
 0xd67   :  { %v831_v39 = vpop.f32.mrb[20].mxu1 }
 0xd68   :  { %v832_v40 = vadd.f32 %v1672_v38, %v831_v39  ;;  %v1898_v41 = vpop.f32.mrb[21].mxu1 }
 0xd69   :  { %v834_v42 = vpop.f32.mrb[22].mxu1 }
 0xd6a   :  { %v835_v43 = vadd.f32 %v1672_v38, %v834_v42  ;;  %v1899_v44 = vpop.f32.mrb[23].mxu1  ;;  %v838_v45 = vadd.f32 %v832_v40, %v665_v1 }
 0xd6c   :  { %v842_v46 = vsel %vm181_vm2, %v838_v45, 0.0  ;;  %v839_v47 = vadd.f32 %v835_v43, %v666_v2 }
 0xd6d   :  { %843 = vadd.xlane.f32.xlu1 %v842_v46 }
 0xd6e   :  { %v845_v48 = vsel %vm181_vm2, %v839_v47, 0.0 }
 0xd6f   :  { %846 = vadd.xlane.f32.xlu0 %v845_v48 }
 0xdfa   :  { %v844_v3 = vpop.xlane.xlu1 %843 }
 0xdfb   :  { %v848_v4 = vmul.f32 0.03125, %v844_v3 }
 0xdfc   :  { %v847_v49 = vpop.xlane.xlu0 %846 }
 0xdfd   :  { %v850_v50 = vsub.f32 %v838_v45, %v848_v4  ;;  %v849_v52 = vmul.f32 0.03125, %v847_v49 }
 0xdff   :  { %v851_v53 = vsub.f32 %v839_v47, %v849_v52  ;;  %v852_v54 = vmul.f32 %v850_v50, %v850_v50 }
 0xe01   :  { %v854_v55 = vsel %vm181_vm2, %v852_v54, 0.0  ;;  %v853_v56 = vmul.f32 %v851_v53, %v851_v53 }
 0xe02   :  { %855 = vadd.xlane.f32.xlu1 %v854_v55 }
 0xe03   :  { %v857_v57 = vsel %vm181_vm2, %v853_v56, 0.0 }
 0xe04   :  { %858 = vadd.xlane.f32.xlu0 %v857_v57 }
 0xe8f   :  { %v856_v60 = vpop.xlane.xlu1 %855 }
 0xe90   :  { %v860_v61 = vmul.f32 0.03125, %v856_v60 }
 0xe91   :  { %v859_v62 = vpop.xlane.xlu0 %858 }
 0xe92   :  { %v862_v63 = vadd.f32 1e-12, %v860_v61  ;;  %v861_v0 = vmul.f32 0.03125, %v859_v62 }
 0xe94   :  { %2064 = vrsqrt.f32 %v862_v63  ;;  %v863_v1 = vadd.f32 1e-12, %v861_v0 }
 0xe96   :  { %2066 = vrsqrt.f32 %v863_v1 }
 0xe9e   :  { %v2065_v2 = vpop.eup %2064 }
 0xe9f   :  { %v866_v6 = vmul.f32 %v2065_v2, %v850_v50 }
 0xea0   :  { %v2067_v7 = vpop.eup %2066 }
 0xea1   :  { %v874_v8 = vmul.f32 %v1678_v5, %v866_v6  ;;  %v867_v9 = vmul.f32 %v2067_v7, %v851_v53 }
 0xea3   :  { %v875_v11 = vmul.f32 %v1678_v5, %v867_v9  ;;  %v2478_v12 = vadd.f32 %v1679_v10, %v874_v8 }
 0xea5   :  { %v2480_v14 = vadd.f32 %v1679_v10, %v875_v11 }
 0xea7   :  { %v884_v15 = vpack.c.bf16 %v2480_v14, %v2478_v12 }
 0xea9   :  { %1905 = vmatmul.mubr.msk.bf16.vlgmr.msra.gmra.mrb[12].mxu0 %vm181_vm2, %v884_v15 }
 0xeaa   :  { %1910 = vmatprep.mubr.msk.bf16.mxu0 %vm2123_vm3, %v2122_v51 }
 0xf7c   :  { %v947_v13 = vpop.f32.mrb[12].mxu0 }
 0xf7d   :  { %v1906_v19 = vpop.f32.mrb[13].mxu0  ;;  %v948_v21 = vadd.f32 %v1685_v17, %v947_v13 }
 0xf7e   :  { %v950_v20 = vpop.f32.mrb[14].mxu0 }
 0xf7f   :  { %v951_v22 = vadd.f32 %v1685_v17, %v950_v20  ;;  %v1907_v23 = vpop.f32.mrb[15].mxu0 }
 0xf80   :  { %v2027_v23 = vld [vmem:[%s2647_s8 + $0x18] sm:$0xff]  }
 0xf81   :  { %v2490_v24 = vpack.c.bf16 %v951_v22, %v948_v21  ;;  %v2026_v21 = vld [vmem:[%s2647_s8 + $0x10] sm:$0xff]  }
 0xf83   :  { %1079 = vrot.lane.b32.xlu0 %v2490_v24, %s2125_s1  ;;  %956 = vrot.lane.b32.xlu1 %v2490_v24, %s2124_s4 }
 0xf87   :  { %1077 = vrot.lane.b32.xlu1 %v2490_v24, %s2127_s2 }
 0xff5   :  { %v957_v25 = vpop.permute.xlu1 %956  ;;  %v1080_v27 = vpop.permute.xlu0 %1079 }
 0xff6   :  { %v962_v26 = vsel %vm299_vm4, %v957_v25, 0  ;;  %v1085_v28 = vsel %vm299_vm4, %v1080_v27, 0 }
 0xff7   :  { %1909 = vmatpush3.bf16.xpose.msra.mxu0 %v962_v26 }
 0xff8   :  { %1920 = vmatprep.subr.bf16.mxu0 %v2122_v51 }
 0xff9   :  { %v1078_v29 = vpop.permute.xlu1 %1077 }
 0xffe   :  { %1911 = vmatmul.mubr.msk.bf16.vlgmr.msra.gmra.mrb[16].mxu0 %vm299_vm4, %v2490_v24 }
 0xfff   :  { %1921 = vmatpush3.bf16.xpose.msra.mxu0 %v1085_v28  ;;  %1922 = vmatprep.mubr.msk.bf16.mxu0 %vm2123_vm3, %v2122_v51 }
0x1000   :  { %1932 = vmatprep.subr.bf16.mxu0 %v2122_v51 }
0x1006   :  { %1923 = vmatmul.mubr.msk.bf16.vlgmr.msra.gmra.mrb[20].mxu0 %vm299_vm4, %v1078_v29 }
0x1007   :  { %1936 = vmatprep.mubr.msk.bf16.mxu0 %vm2123_vm3, %v2122_v51  ;;  %1933 = vmatpush3.bf16.msra.mxu0 %v2026_v21 }
0x1008   :  { %1934 = vmatprep.subr.bf16.mxu0 %v2122_v51 }
0x100b   :  { %1935 = vmatpush3.bf16.msra.mxu0 %v2027_v23 }
0x100c   :  { %1948 = vmatprep.subr.bf16.mxu0 %v2122_v51 }
0x10d1   :  { %v998_v30 = vpop.f32.mrb[16].mxu0 }
0x10d2   :  { %v999_v31 = vadd.f32 %v998_v30, %v2352_v16  ;;  %v1912_v32 = vpop.f32.mrb[17].mxu0 }
0x10d3   :  { %v1001_v33 = vpop.f32.mrb[18].mxu0 }
0x10d4   :  { %v1002_v34 = vadd.f32 %v1001_v33, %v2357_v18  ;;  %v1913_v35 = vpop.f32.mrb[19].mxu0  ;;  %v1005_v36 = vsel %vm299_vm4, %v999_v31, -inf }
0x10d5   :  { %1006 = vmax.xlane.f32.xlu1 %v1005_v36  ;;  %v1698_v36 = vld [vmem:[%s2648_s9 + $0x1] ss:$0 sm:$0xff] }
0x10d6   :  { %v1008_v37 = vsel %vm299_vm4, %v1002_v34, -inf }
0x10d7   :  { %1009 = vmax.xlane.f32.xlu0 %v1008_v37 }
0x10d9   :  { %v1121_v38 = vpop.f32.mrb[20].mxu0 }
0x10da   :  { %v1122_v39 = vadd.f32 %v1121_v38, %v2352_v16  ;;  %v1924_v40 = vpop.f32.mrb[21].mxu0 }
0x10db   :  { %v1124_v41 = vpop.f32.mrb[22].mxu0 }
0x10dc   :  { %v1125_v42 = vadd.f32 %v1124_v41, %v2357_v18  ;;  %v1925_v43 = vpop.f32.mrb[23].mxu0  ;;  %v1128_v44 = vsel %vm299_vm4, %v1122_v39, -inf }
0x10dd   :  { %1129 = vmax.xlane.f32.xlu0 %v1128_v44 }
0x10de   :  { %v1131_v45 = vsel %vm299_vm4, %v1125_v42, -inf }
0x10df   :  { %1132 = vmax.xlane.f32.xlu1 %v1131_v45 }
0x1162   :  { %v1007_v46 = vpop.xlane.xlu1 %1006 }
0x1163   :  { %v1011_v47 = vsub.f32 %v999_v31, %v1007_v46 }
0x1164   :  { %v1010_v48 = vpop.xlane.xlu0 %1009 }
0x1165   :  { %v1013_v3 = vmul.f32 1.442695, %v1011_v47  ;;  %v1012_v4 = vsub.f32 %v1002_v34, %v1010_v48 }
0x1167   :  { %2068 = vpow2.f32 %v1013_v3  ;;  %v1015_v49 = vmul.f32 1.442695, %v1012_v4 }
0x1169   :  { %2070 = vpow2.f32 %v1015_v49 }
0x116a   :  { %v1130_v16 = vpop.xlane.xlu0 %1129 }
0x116b   :  { %v1134_v50 = vsub.f32 %v1122_v39, %v1130_v16 }
0x116c   :  { %v1133_v52 = vpop.xlane.xlu1 %1132 }
0x116d   :  { %v1136_v53 = vmul.f32 1.442695, %v1134_v50  ;;  %v1135_v18 = vsub.f32 %v1125_v42, %v1133_v52 }
0x116f   :  { %2072 = vpow2.f32 %v1136_v53  ;;  %v1138_v54 = vmul.f32 1.442695, %v1135_v18  ;;  %v2029_v18 = vld [vmem:[%s2651_s12 + $0x18] sm:$0xff]  }
0x1171   :  { %v2069_v55 = vpop.eup %2068  ;;  %2074 = vpow2.f32 %v1138_v54 }
0x1172   :  { %v1017_v56 = vsel %vm299_vm4, %v2069_v55, 0.0 }
0x1173   :  { %v2071_v57 = vpop.eup %2070  ;;  %1018 = vadd.xlane.f32.xlu0 %v1017_v56 }
0x1174   :  { %v1020_v58 = vsel %vm299_vm4, %v2071_v57, 0.0 }
0x1175   :  { %1021 = vadd.xlane.f32.xlu1 %v1020_v58 }
0x1179   :  { %v2073_v59 = vpop.eup %2072 }
0x117a   :  { %v1140_v60 = vsel %vm299_vm4, %v2073_v59, 0.0 }
0x117b   :  { %v2075_v61 = vpop.eup %2074  ;;  %1141 = vadd.xlane.f32.xlu0 %v1140_v60 }
0x117c   :  { %v1143_v62 = vsel %vm299_vm4, %v2075_v61, 0.0 }
0x117d   :  { %1144 = vadd.xlane.f32.xlu1 %v1143_v62 }
0x118e   :  { %1151 = vrot.lane.b32.xlu1 %v2490_v24, %s2128_s25 }
0x1191   :  { %1028 = vrot.lane.b32.xlu0 %v2490_v24, %s2126_s24 }
0x1200   :  { %v1019_v63 = vpop.xlane.xlu0 %1018 }
0x1201   :  { %2076 = vrcp.f32 %v1019_v63 }
0x1202   :  { %v1022_v0 = vpop.xlane.xlu1 %1021 }
0x1203   :  { %2078 = vrcp.f32 %v1022_v0 }
0x1208   :  { %v1142_v1 = vpop.xlane.xlu0 %1141 }
0x1209   :  { %2080 = vrcp.f32 %v1142_v1 }
0x120a   :  { %v1145_v2 = vpop.xlane.xlu1 %1144 }
0x120b   :  { %v2077_v5 = vpop.eup %2076  ;;  %2082 = vrcp.f32 %v1145_v2  ;;  %v1705_v2 = vld [vmem:[%s2650_s11 + $0x1] ss:$0 sm:$0xff] }
0x120c   :  { %v1029_v6 = vpop.permute.xlu0 %1028  ;;  %v1025_v8 = vmul.f32 %v2077_v5, %v2069_v55 }
0x120d   :  { %v2079_v7 = vpop.eup %2078  ;;  %1915 = vmatpush3.bf16.msra.mxu1 %v1029_v6 }
0x120e   :  { %v1026_v9 = vmul.f32 %v2079_v7, %v2071_v57  ;;  %1926 = vmatprep.subr.bf16.mxu1 %v2122_v51  ;;  %v1152_v11 = vpop.permute.xlu1 %1151 }
0x1210   :  { %v1027_v10 = vpack.c.bf16 %v1026_v9, %v1025_v8  ;;  %v2030_v9 = vld [vmem:[%s2653_s14 + $0x20] sm:$0xff]  }
0x1212   :  { %1917 = vmatmul.mubr.msk.bf16.vlgmr.msra.gmra.mrb[24].mxu1 %vm299_vm4, %v1027_v10  ;;  %v2031_v10 = vld [vmem:[%s2653_s14 + $0x28] sm:$0xff]  }
0x1213   :  { %v2081_v15 = vpop.eup %2080  ;;  %1927 = vmatpush3.bf16.msra.mxu1 %v1152_v11  ;;  %1928 = vmatprep.mubr.msk.bf16.mxu1 %vm2123_vm3, %v2122_v51  ;;  %v2032_v11 = vld [vmem:[%s2653_s14 + $0x30] sm:$0xff]  }
0x1214   :  { %1940 = vmatprep.subr.bf16.mxu1 %v2122_v51  ;;  %v1148_v13 = vmul.f32 %v2081_v15, %v2073_v59  ;;  %v2033_v15 = vld [vmem:[%s2653_s14 + $0x38] sm:$0xff]  }
0x1215   :  { %v2083_v17 = vpop.eup %2082 }
0x1216   :  { %v1149_v19 = vmul.f32 %v2083_v17, %v2075_v61  ;;  %v1704_v61 = vld [vmem:[%s2649_s10 + $0x1] ss:$0 sm:$0xff] }
0x1217   :  { %v1711_v17 = vld [vmem:[%s2652_s13 + $0x1] ss:$0 sm:$0xff] }
0x1218   :  { %v1150_v20 = vpack.c.bf16 %v1149_v19, %v1148_v13 }
0x121a   :  { %1929 = vmatmul.mubr.msk.bf16.vlgmr.msra.gmra.mrb[28].mxu1 %vm299_vm4, %v1150_v20 }
0x121b   :  { %1944 = vmatprep.mubr.msk.bf16.mxu1 %vm2123_vm3, %v2122_v51 }
0x12e5   :  { %v1068_v22 = vpop.f32.mrb[24].mxu1 }
0x12e6   :  { %1075 = vst.msk [vmem:[#allocation2] sm:$0xff] %vm299_vm4, %v1068_v22  ;;  %v1918_v24 = vpop.f32.mrb[25].mxu1 }
0x12e7   :  { %v1071_v25 = vpop.f32.mrb[26].mxu1 }
0x12e8   :  { %1076 = vst.msk [vmem:[#allocation2 + $0x8] sm:$0xff] %vm299_vm4, %v1071_v25  ;;  %v1919_v26 = vpop.f32.mrb[27].mxu1 }
0x12ed   :  { %v1191_v27 = vpop.f32.mrb[28].mxu1 }
0x12ee   :  { %1200 = vrot.lane.b32.xlu1 %v1191_v27, %s2129_s26  ;;  %v1930_v28 = vpop.f32.mrb[29].mxu1 }
0x12ef   :  { %v1194_v29 = vpop.f32.mrb[30].mxu1 }
0x12f0   :  { %1202 = vrot.lane.b32.xlu0 %v1194_v29, %s2129_s26  ;;  %v1931_v30 = vpop.f32.mrb[31].mxu1 }
0x1360   :  { %v1201_v31 = vpop.permute.xlu1 %1200 }
0x1361   :  { %1206 = vst.msk [vmem:[#allocation2] sm:$0xff] %vm548_vm5, %v1201_v31 }
0x1362   :  { %v1203_v32 = vpop.permute.xlu0 %1202 }
0x1363   :  { %1207 = vst.msk [vmem:[#allocation2 + $0x8] sm:$0xff] %vm548_vm5, %v1203_v32 }
0x1368   :  { %v1208_v33 = vld [vmem:[#allocation2] sm:$0xff] }
0x136a   :  { %v1209_v34 = vld [vmem:[#allocation2 + $0x8] sm:$0xff] }
0x136b   :  { %v1210_v35 = vpack.c.bf16 %v1209_v34, %v1208_v33 }
0x136d   :  { %1937 = vmatmul.mubr.msk.bf16.vlgmr.msra.gmra.mrb[24].mxu0 %vm181_vm2, %v1210_v35 }
0x136e   :  { %1956 = vmatprep.mubr.msk.bf16.mxu0 %vm2123_vm3, %v2122_v51  ;;  %1949 = vmatpush3.bf16.msra.mxu0 %v2030_v9 }
0x136f   :  { %1950 = vmatprep.subr.bf16.mxu0 %v2122_v51 }
0x1372   :  { %1951 = vmatpush3.bf16.msra.mxu0 %v2031_v10 }
0x1373   :  { %1952 = vmatprep.subr.bf16.mxu0 %v2122_v51 }
0x1376   :  { %1953 = vmatpush3.bf16.msra.mxu0 %v2032_v11  ;;  %v1733_v11 = vld [vmem:[%s2656_s17 + $0x1] ss:$0 sm:$0xff]  ;;  %s2130_s17 = smov [#allocation3]  }
0x1377   :  { %1954 = vmatprep.subr.bf16.mxu0 %v2122_v51 }
0x137a   :  { %1955 = vmatpush3.bf16.msra.mxu0 %v2033_v15 }
0x1440   :  { %v1273_v37 = vpop.f32.mrb[24].mxu0 }
0x1441   :  { %v1274_v38 = vadd.f32 %v1698_v36, %v1273_v37  ;;  %v1938_v39 = vpop.f32.mrb[25].mxu0 }
0x1442   :  { %v1276_v40 = vpop.f32.mrb[26].mxu0 }
0x1443   :  { %v1277_v41 = vadd.f32 %v1698_v36, %v1276_v40  ;;  %v1939_v42 = vpop.f32.mrb[27].mxu0  ;;  %v1280_v43 = vadd.f32 %v1274_v38, %v2478_v12 }
0x1445   :  { %v1286_v44 = vsel %vm181_vm2, %v1280_v43, 0.0  ;;  %v1281_v45 = vadd.f32 %v1277_v41, %v2480_v14  ;;  %v2028_v14 = vld [vmem:[%s2651_s12 + $0x10] sm:$0xff]   ;;  %s1637_s12 = sshll.u32 %s2130_s17, 4  ;;  %s1638_s12 = int_to_ptr.vmem [resolvable:$true] %s1637_s12 }
0x1446   :  { %1287 = vadd.xlane.f32.xlu1 %v1286_v44  ;;  %1941 = vmatpush3.bf16.msra.mxu1 %v2028_v14  ;;  %s2096_s23 = scalar_lea.vmem %s1638_s12, 256  ;;  %p2101_p1 = scmp.lt.s32.totalorder %s1638_s12, %s1638_s12 }
0x1447   :  { %v1289_v46 = vsel %vm181_vm2, %v1281_v45, 0.0  ;;  %1942 = vmatprep.subr.bf16.mxu1 %v2122_v51  ;;  %p2097_p0 = scmp.ne.s32.totalorder %s1638_s12, %s2096_s23  ;;  %p2102_p2 = scmp.lt.s32.totalorder %s2096_s23, %s2096_s23 }
0x1448   :  { %1290 = vadd.xlane.f32.xlu0 %v1289_v46 }
0x1449   :  { %p2103_p3 = por %p2102_p2, %p2101_p1 }
0x144a   :  { %1943 = vmatpush3.bf16.msra.mxu1 %v2029_v18 }
0x144b   :  { %1960 = vmatprep.subr.bf16.mxu1 %v2122_v51  ;;  %p2104_p4 = pnand %p2103_p3, %p2097_p0 }
0x14d3   :  { %v1288_v47 = vpop.xlane.xlu1 %1287 }
0x14d4   :  { %v1292_v48 = vmul.f32 0.03125, %v1288_v47 }
0x14d5   :  { %v1291_v3 = vpop.xlane.xlu0 %1290 }
0x14d6   :  { %v1294_v4 = vsub.f32 %v1280_v43, %v1292_v48  ;;  %v1293_v49 = vmul.f32 0.03125, %v1291_v3  ;;  %v1724_v43 = vld [vmem:[%s2654_s15 + $0x1] ss:$0 sm:$0xff] }
0x14d8   :  { %v1295_v16 = vsub.f32 %v1281_v45, %v1293_v49  ;;  %v1296_v50 = vmul.f32 %v1294_v4, %v1294_v4 }
0x14da   :  { %v1298_v52 = vsel %vm181_vm2, %v1296_v50, 0.0  ;;  %v1297_v53 = vmul.f32 %v1295_v16, %v1295_v16 }
0x14db   :  { %1299 = vadd.xlane.f32.xlu0 %v1298_v52 }
0x14dc   :  { %v1301_v12 = vsel %vm181_vm2, %v1297_v53, 0.0 }
0x14dd   :  { %1302 = vadd.xlane.f32.xlu1 %v1301_v12 }
0x1568   :  { %v1300_v54 = vpop.xlane.xlu0 %1299 }
0x1569   :  { %v1304_v55 = vmul.f32 0.03125, %v1300_v54 }
0x156a   :  { %v1303_v56 = vpop.xlane.xlu1 %1302 }
0x156b   :  { %v1306_v57 = vadd.f32 1e-12, %v1304_v55  ;;  %v1305_v58 = vmul.f32 0.03125, %v1303_v56 }
0x156d   :  { %2084 = vrsqrt.f32 %v1306_v57  ;;  %v1307_v59 = vadd.f32 1e-12, %v1305_v58 }
0x156f   :  { %2086 = vrsqrt.f32 %v1307_v59  ;;  %v2034_v59 = vld [vmem:[%s2657_s18] sm:$0xff]  }
0x1577   :  { %v2085_v60 = vpop.eup %2084 }
0x1578   :  { %v1310_v62 = vmul.f32 %v2085_v60, %v1294_v4  ;;  %v2035_v60 = vld [vmem:[%s2657_s18 + $0x8] sm:$0xff]  }
0x1579   :  { %v2087_v63 = vpop.eup %2086 }
0x157a   :  { %v1318_v0 = vmul.f32 %v1704_v61, %v1310_v62  ;;  %v1311_v1 = vmul.f32 %v2087_v63, %v1295_v16 }
0x157c   :  { %v1319_v5 = vmul.f32 %v1704_v61, %v1311_v1  ;;  %v1326_v6 = vadd.f32 %v1705_v2, %v1318_v0 }
0x157e   :  { %v1327_v7 = vadd.f32 %v1705_v2, %v1319_v5  ;;  %v1550_v5 = vld [vmem:[%s2659_s20] sm:$0xff] }
0x157f   :  { %vm1552_vm7 = vcmp.ge.f32.partialorder %v1550_v5, 0.1 }
0x1580   :  { %v1328_v8 = vpack.c.bf16 %v1327_v7, %v1326_v6 }
0x1582   :  { %1945 = vmatmul.mubr.msk.bf16.vlgmr.msra.gmra.mrb[32].mxu1 %vm181_vm2, %v1328_v8  ;;  %v1551_v8 = vld [vmem:[%s2659_s20 + $0x8] sm:$0xff] }
0x1583   :  { %1964 = vmatprep.mubr.msk.bf16.mxu1 %vm2123_vm3, %v2122_v51  ;;  %1961 = vmatpush3.bf16.msra.mxu1 %v2034_v59  ;;  %vm1553_vm8 = vcmp.ge.f32.partialorder %v1551_v8, 0.1 }
0x1584   :  { %1962 = vmatprep.subr.bf16.mxu1 %v2122_v51 }
0x1587   :  { %1963 = vmatpush3.bf16.msra.mxu1 %v2035_v60 }
0x1655   :  { %v1391_v13 = vpop.f32.mrb[32].mxu1 }
0x1656   :  { %v1392_v19 = vadd.f32 %v1711_v17, %v1391_v13  ;;  %v1946_v20 = vpop.f32.mrb[33].mxu1  ;;  %v1734_v13 = vsel %vm1552_vm7, 1.0, %v2122_v51 }
0x1657   :  { %v1394_v21 = vpop.f32.mrb[34].mxu1 }
0x1658   :  { %v1398_v22 = vmul.f32 %v1392_v19, %v1392_v19  ;;  %v1395_v23 = vadd.f32 %v1711_v17, %v1394_v21  ;;  %v1947_v24 = vpop.f32.mrb[35].mxu1  ;;  %v1735_v21 = vsel %vm1553_vm8, 1.0, %v2122_v51 }
0x165a   :  { %v1400_v25 = vmul.f32 %v1398_v22, %v1392_v19  ;;  %v1399_v26 = vmul.f32 %v1395_v23, %v1395_v23 }
0x165c   :  { %v1402_v27 = vmul.f32 0.044715, %v1400_v25  ;;  %v1401_v28 = vmul.f32 %v1399_v26, %v1395_v23 }
0x165e   :  { %v1404_v29 = vadd.f32 %v1402_v27, %v1392_v19  ;;  %v1403_v30 = vmul.f32 0.044715, %v1401_v28  ;;  %v1736_v28 = vld [vmem:[%s2658_s19] ss:$0 sm:$0xff] }
0x1660   :  { %v1406_v31 = vmul.f32 0.7978846, %v1404_v29  ;;  %v1405_v32 = vadd.f32 %v1403_v30, %v1395_v23 }
0x1662   :  { %2088 = vtanh.f32 %v1406_v31  ;;  %v1407_v33 = vmul.f32 0.7978846, %v1405_v32 }
0x1664   :  { %2090 = vtanh.f32 %v1407_v33 }
0x166c   :  { %v2089_v34 = vpop.eup %2088 }
0x166d   :  { %v1410_v35 = vadd.f32 1.0, %v2089_v34 }
0x166e   :  { %v2091_v36 = vpop.eup %2090 }
0x166f   :  { %v1412_v37 = vmul.f32 0.5, %v1410_v35  ;;  %v1411_v38 = vadd.f32 1.0, %v2091_v36 }
0x1671   :  { %v1413_v39 = vmul.f32 0.5, %v1411_v38  ;;  %v1414_v40 = vmul.f32 %v1412_v37, %v1392_v19 }
0x1673   :  { %v1415_v41 = vmul.f32 %v1413_v39, %v1395_v23 }
0x1675   :  { %v1416_v42 = vpack.c.bf16 %v1415_v41, %v1414_v40 }
0x1677   :  { %1957 = vmatmul.mubr.msk.bf16.vlgmr.msra.gmra.mrb[28].mxu0 %vm793_vm6, %v1416_v42 }
0x174a   :  { %v1495_v44 = vpop.f32.mrb[28].mxu0 }
0x174b   :  { %v1496_v45 = vadd.f32 %v1724_v43, %v1495_v44  ;;  %v1958_v46 = vpop.f32.mrb[29].mxu0 }
0x174c   :  { %v1498_v47 = vpop.f32.mrb[30].mxu0 }
0x174d   :  { %v1499_v48 = vadd.f32 %v1724_v43, %v1498_v47  ;;  %v1959_v3 = vpop.f32.mrb[31].mxu0  ;;  %v1502_v4 = vadd.f32 %v1496_v45, %v1326_v6 }
0x174f   :  { %v1508_v49 = vsel %vm181_vm2, %v1502_v4, 0.0  ;;  %v1503_v16 = vadd.f32 %v1499_v48, %v1327_v7  ;;  %v1732_v7 = vld [vmem:[%s2679_s28 + $0x1] ss:$0 sm:$0xff] }
0x1750   :  { %1509 = vadd.xlane.f32.xlu0 %v1508_v49 }
0x1751   :  { %v1511_v50 = vsel %vm181_vm2, %v1503_v16, 0.0 }
0x1752   :  { %1512 = vadd.xlane.f32.xlu1 %v1511_v50 }
0x17dd   :  { %v1510_v52 = vpop.xlane.xlu0 %1509 }
0x17de   :  { %v1514_v53 = vmul.f32 0.03125, %v1510_v52 }
0x17df   :  { %v1513_v12 = vpop.xlane.xlu1 %1512 }
0x17e0   :  { %v1516_v14 = vsub.f32 %v1502_v4, %v1514_v53  ;;  %v1515_v18 = vmul.f32 0.03125, %v1513_v12 }
0x17e2   :  { %v1517_v54 = vsub.f32 %v1503_v16, %v1515_v18  ;;  %v1518_v55 = vmul.f32 %v1516_v14, %v1516_v14 }
0x17e4   :  { %v1520_v56 = vsel %vm181_vm2, %v1518_v55, 0.0  ;;  %v1519_v57 = vmul.f32 %v1517_v54, %v1517_v54 }
0x17e5   :  { %1521 = vadd.xlane.f32.xlu0 %v1520_v56 }
0x17e6   :  { %v1523_v58 = vsel %vm181_vm2, %v1519_v57, 0.0 }
0x17e7   :  { %1524 = vadd.xlane.f32.xlu1 %v1523_v58 }
0x1872   :  { %v1522_v61 = vpop.xlane.xlu0 %1521 }
0x1873   :  { %v1526_v62 = vmul.f32 0.03125, %v1522_v61 }
0x1874   :  { %v1525_v63 = vpop.xlane.xlu1 %1524 }
0x1875   :  { %v1528_v0 = vadd.f32 1e-12, %v1526_v62  ;;  %v1527_v1 = vmul.f32 0.03125, %v1525_v63 }
0x1877   :  { %2092 = vrsqrt.f32 %v1528_v0  ;;  %v1529_v2 = vadd.f32 1e-12, %v1527_v1 }
0x1879   :  { %2094 = vrsqrt.f32 %v1529_v2 }
0x1881   :  { %v2093_v6 = vpop.eup %2092 }
0x1882   :  { %v1532_v9 = vmul.f32 %v2093_v6, %v1516_v14 }
0x1883   :  { %v2095_v10 = vpop.eup %2094 }
0x1884   :  { %v1540_v15 = vmul.f32 %v1732_v7, %v1532_v9  ;;  %v1533_v17 = vmul.f32 %v2095_v10, %v1517_v54 }
0x1886   :  { %v1548_v19 = vadd.f32 %v1733_v11, %v1540_v15  ;;  %v1541_v20 = vmul.f32 %v1732_v7, %v1533_v17 }
0x1888   :  { %v1549_v22 = vadd.f32 %v1733_v11, %v1541_v20  ;;  %v1558_v23 = vmul.f32 %v1734_v13, %v1548_v19 }
0x188a   :  { %v1559_v24 = vmul.f32 %v1735_v21, %v1549_v22  ;;  %v1560_v25 = vmul.f32 1.1111112, %v1558_v23 }
0x188c   :  { %v1561_v26 = vmul.f32 1.1111112, %v1559_v24 }
0x188e   :  { %v1562_v27 = vpack.c.bf16 %v1561_v26, %v1560_v25 }
0x1890   :  { %1965 = vmatmul.mubr.msk.bf16.vlgmr.msra.gmra.mrb[36].mxu1 %vm181_vm2, %v1562_v27 }
0x1963   :  { %v1623_v29 = vpop.f32.mrb[36].mxu1 }
0x1964   :  { %v1624_v30 = vadd.f32 %v1736_v28, %v1623_v29  ;;  %v1966_v31 = vpop.f32.mrb[37].mxu1 }
0x1965   :  { %v1626_v32 = vpop.f32.mrb[38].mxu1 }
0x1966   :  { %1630 = vst [vmem:[#allocation3] sm:$0xff] %v1624_v30  ;;  %v1627_v51 = vadd.f32 %v1736_v28, %v1626_v32  ;;  %v1967_v33 = vpop.f32.mrb[39].mxu1 }
0x1968   :  { %1631 = vst [vmem:[#allocation3 + $0x8] sm:$0xff] %v1627_v51 }
0x1969   :  { %2107 = shalt.err (!%p2104_p4)
}
0x196a   :  { %s2108_s3 = scalar_lea.hbm %s2660_s21, 256 }
0x196b   :  { %p2109_p5 = scmp.ne.s32.totalorder %s2660_s21, %s2108_s3  ;;  %p2112_p6 = scmp.lt.u32.totalorder %s2108_s3, %s2660_s21 }
0x196d   :  { %p2114_p7 = pnand %p2112_p6, %p2109_p5 }
0x196f   :  { %2117 = shalt.err (!%p2114_p7)
}
0x1970   :  { %s2131_s0 = smov 128   ;;  %s2132_s30 = smov 8  }
0x1971   :  { %1643 = dma.vmem_to_hbm [thread:$0]  %s1638_s12, 256, %s2660_s21, [#allocation4], %s2131_s0, %s2131_s0, %s2132_s30  }
0x1972   :  { %2118 = dma.done.wait [#allocation4], 256  }
0x1973   :  { %2119 = vsyncadd [#allocation4], 4294967040 }
0x1974   :  { %1647 = vsyncpa [#allocation4], 1 }

</bundles_post_ra>
